<compile_context>
chip_gen: v7x
topology: tpu7x:2x2x1
jax: 0.10.0
libtpu: 0.0.40
codegen_flags: <defaults>
</compile_context>

<pallas_src>
import jax
import jax.numpy as jnp
from jax.experimental import pallas as pl
from jax.experimental.pallas import tpu as pltpu

LANE = 128                     # last matmul dims padded to multiples of this
_ROW_ALIGN = 16                # row-tile granularity (bf16 native sublane tile)
_TM_MAX = 1024                 # max rows per M-tile (a few MiB of VMEM at most)
COMPUTE_DTYPE = jnp.bfloat16   # MXU input dtype (f32 accumulation)
_VMEM_LIMIT = 32 * 1024 * 1024


def _round_up(x, m):
    return ((x + m - 1) // m) * m


def _cdiv(a, b):
    return -(-a // b)


# ---------------------------------------------------------------------------
# Pallas kernels
# ---------------------------------------------------------------------------
def _conv_pool_kernel(x_ref, w_ref, b_ref, o_ref):
    """Conv-as-matmul fused with 2x2 max-pool.

    x_ref: (4, tm, Kp) bf16 patches, one leading slot per pool quadrant.
    Four MXU matmuls + bias + ReLU, then a lane-wise max across quadrants
    (== maxpool2x2(relu(conv)) since ReLU is monotone).  f32 accumulate,
    bf16 store (halves HBM writeback; the next layer consumes bf16 anyway).
    """
    w = w_ref[...]
    b = b_ref[...]

    def quadrant(q):
        y = jnp.dot(x_ref[q], w, preferred_element_type=jnp.float32)
        return jnp.maximum(y + b, 0.0)

    m = quadrant(0)
    for q in range(1, 4):
        m = jnp.maximum(m, quadrant(q))
    o_ref[...] = m.astype(o_ref.dtype)


def _fused_fc_kernel(x_ref, w1_ref, b1_ref, w2_ref, b2_ref, w3_ref, b3_ref,
                     o_ref):
    """fc1(ReLU) -> fc2(ReLU) -> fc3, all weights VMEM-resident, one call."""
    h = jnp.dot(x_ref[...], w1_ref[...], preferred_element_type=jnp.float32)
    h = jnp.maximum(h + b1_ref[...], 0.0)
    h = jnp.dot(h.astype(w2_ref.dtype), w2_ref[...],
                preferred_element_type=jnp.float32)
    h = jnp.maximum(h + b2_ref[...], 0.0)
    h = jnp.dot(h.astype(w3_ref.dtype), w3_ref[...],
                preferred_element_type=jnp.float32)
    o_ref[...] = (h + b3_ref[...]).astype(o_ref.dtype)


# ---------------------------------------------------------------------------
# Row tiling: balanced tiles, minimal zero padding, >=2 parallel steps (v7x)
# ---------------------------------------------------------------------------
def _row_tiling(m, tm_max=_TM_MAX):
    mp = _round_up(m, _ROW_ALIGN)
    ntiles = _cdiv(mp, tm_max)
    if mp >= 2 * _ROW_ALIGN:
        # v7x has 2 TensorCores sharing the "parallel" grid axis: keep >=2
        # steps whenever each step still gets a full row-tile of real work.
        ntiles = max(ntiles, 2)
    tm = _round_up(_cdiv(mp, ntiles), _ROW_ALIGN)
    mp = _round_up(mp, tm)
    return tm, mp


# ---------------------------------------------------------------------------
# Pallas wrappers
# ---------------------------------------------------------------------------
def pallas_conv_pool(patches, w, b):
    """patches: (4, M, Kp) bf16 quadrant-grouped im2col rows; w: (Kp, Np) bf16;
    b: (1, Np) f32.  Returns (Mp, Np) bf16 = maxpool2x2(relu(conv))."""
    _, m, kp = patches.shape
    np_ = w.shape[1]
    tm, mp = _row_tiling(m)
    if mp != m:
        patches = jnp.pad(patches, ((0, 0), (0, mp - m), (0, 0)))
    grid = (mp // tm,)
    cost = pl.CostEstimate(
        flops=2 * 4 * mp * kp * np_ + 4 * mp * np_,
        transcendentals=0,
        bytes_accessed=(4 * mp * kp + kp * np_) * 2 + np_ * 4 + mp * np_ * 2,
    )
    return pl.pallas_call(
        _conv_pool_kernel,
        out_shape=jax.ShapeDtypeStruct((mp, np_), COMPUTE_DTYPE),
        grid=grid,
        in_specs=[
            pl.BlockSpec((4, tm, kp), lambda i: (0, i, 0)),
            pl.BlockSpec((kp, np_), lambda i: (0, 0)),
            pl.BlockSpec((1, np_), lambda i: (0, 0)),
        ],
        out_specs=pl.BlockSpec((tm, np_), lambda i: (i, 0)),
        compiler_params=pltpu.CompilerParams(
            dimension_semantics=("parallel",),
            vmem_limit_bytes=_VMEM_LIMIT,
        ),
        cost_estimate=cost,
    )(patches, w, b)


def pallas_fused_fc(x, w1, b1, w2, b2, w3, b3):
    """Fused fc1->fc2->fc3. x: (M, K1p) bf16; all w/b padded to 128 lanes."""
    m, k1 = x.shape
    n1, n2, n3 = w1.shape[1], w2.shape[1], w3.shape[1]
    tm, mp = _row_tiling(m)
    if mp != m:
        x = jnp.pad(x, ((0, mp - m), (0, 0)))
    grid = (mp // tm,)
    cost = pl.CostEstimate(
        flops=2 * mp * (k1 * n1 + n1 * n2 + n2 * n3),
        transcendentals=0,
        bytes_accessed=(mp * k1 + k1 * n1 + n1 * n2 + n2 * n3) * 2
                       + (n1 + n2 + n3) * 4 + mp * n3 * 4,
    )
    out = pl.pallas_call(
        _fused_fc_kernel,
        out_shape=jax.ShapeDtypeStruct((mp, n3), jnp.float32),
        grid=grid,
        in_specs=[
            pl.BlockSpec((tm, k1), lambda i: (i, 0)),
            pl.BlockSpec((k1, n1), lambda i: (0, 0)),
            pl.BlockSpec((1, n1), lambda i: (0, 0)),
            pl.BlockSpec((n1, n2), lambda i: (0, 0)),
            pl.BlockSpec((1, n2), lambda i: (0, 0)),
            pl.BlockSpec((n2, n3), lambda i: (0, 0)),
            pl.BlockSpec((1, n3), lambda i: (0, 0)),
        ],
        out_specs=pl.BlockSpec((tm, n3), lambda i: (i, 0)),
        compiler_params=pltpu.CompilerParams(
            dimension_semantics=("parallel",),
            vmem_limit_bytes=_VMEM_LIMIT,
        ),
        cost_estimate=cost,
    )(x, w1, b1, w2, b2, w3, b3)
    return out[:m]


# ---------------------------------------------------------------------------
# Layer helpers (plain-JAX glue: quadrant im2col, padding, reshapes)
# ---------------------------------------------------------------------------
def _im2col_pool_quadrants(x, kh, kw):
    """x: (N, H, W, C) NHWC -> (4, N*PH*PW, kh*kw*C) patches.

    VALID conv, stride 1, followed by a 2x2/stride-2 pool: quadrant q=(qh,qw)
    holds the patches of conv-output positions (2*ph+qh, 2*pw+qw).  Rows are
    ordered (n, ph, pw); columns are ordered (kh, kw, c)."""
    n, h, w, c = x.shape
    oh, ow = h - kh + 1, w - kw + 1
    ph_, pw_ = oh // 2, ow // 2
    quads = []
    for qh in range(2):
        for qw in range(2):
            cols = [x[:, qh + i: qh + i + 2 * ph_: 2,
                       qw + j: qw + j + 2 * pw_: 2, :]
                    for i in range(kh) for j in range(kw)]   # each (N,PH,PW,C)
            p = jnp.stack(cols, axis=3)                      # (N,PH,PW,kh*kw,C)
            quads.append(p.reshape(n * ph_ * pw_, kh * kw * c))
    return jnp.stack(quads, axis=0), ph_, pw_


def conv_relu_pool(x, wp, bp, *, oc, kh=5, kw=5):
    """relu(conv2d(x)) + 2x2 maxpool, fused in one Pallas call.
    x: (N, H, W, C) bf16 NHWC; wp: (Kp, Np) bf16 pre-flattened (kh,kw,c) order.
    Returns (N, PH, PW, oc) bf16 NHWC."""
    n = x.shape[0]
    patches, ph_, pw_ = _im2col_pool_quadrants(x, kh, kw)    # (4, M, K) bf16
    k = patches.shape[-1]
    kp = wp.shape[0]
    if kp != k:
        patches = jnp.pad(patches, ((0, 0), (0, 0), (0, kp - k)))
    y = pallas_conv_pool(patches, wp, bp)                    # (Mp, Np) bf16
    y = y[: n * ph_ * pw_, :oc]
    return y.reshape(n, ph_, pw_, oc)                        # stays NHWC


# ---------------------------------------------------------------------------
# Parameters (PyTorch layout) + one-time kernel-layout preparation
# ---------------------------------------------------------------------------
def init_params(key):
    ks = jax.random.split(key, 10)
    scale = 0.05
    return {
        "conv1_w": scale * jax.random.normal(ks[0], (16, 3, 5, 5), jnp.float32),
        "conv1_b": scale * jax.random.normal(ks[1], (16,), jnp.float32),
        "conv2_w": scale * jax.random.normal(ks[2], (32, 16, 5, 5), jnp.float32),
        "conv2_b": scale * jax.random.normal(ks[3], (32,), jnp.float32),
        "fc1_w": scale * jax.random.normal(ks[4], (120, 32 * 5 * 5), jnp.float32),
        "fc1_b": scale * jax.random.normal(ks[5], (120,), jnp.float32),
        "fc2_w": scale * jax.random.normal(ks[6], (84, 120), jnp.float32),
        "fc2_b": scale * jax.random.normal(ks[7], (84,), jnp.float32),
        "fc3_w": scale * jax.random.normal(ks[8], (10, 84), jnp.float32),
        "fc3_b": scale * jax.random.normal(ks[9], (10,), jnp.float32),
    }


def _prep_dense(w_out_in, b, k_pad, n_pad):
    """(N_out, K) weight -> (Kp, Np) bf16 (transposed, zero-padded),
    bias -> (1, Np) f32 (zero-padded).  Done once, outside the forward."""
    n_out, k = w_out_in.shape
    wt = jnp.zeros((k_pad, n_pad), COMPUTE_DTYPE)
    wt = wt.at[:k, :n_out].set(w_out_in.T.astype(COMPUTE_DTYPE))
    bp = jnp.zeros((1, n_pad), jnp.float32)
    bp = bp.at[0, :n_out].set(b.astype(jnp.float32))
    return wt, bp


def prepare_params(p):
    out = {}
    # Conv weights: (OC, IC, KH, KW) -> (OC, KH*KW*IC) to match the NHWC
    # im2col column order (kh, kw, c).
    c1 = p["conv1_w"].transpose(0, 2, 3, 1).reshape(16, 5 * 5 * 3)
    out["conv1_w"], out["conv1_b"] = _prep_dense(
        c1, p["conv1_b"], _round_up(5 * 5 * 3, LANE), _round_up(16, LANE))
    c2 = p["conv2_w"].transpose(0, 2, 3, 1).reshape(32, 5 * 5 * 16)
    out["conv2_w"], out["conv2_b"] = _prep_dense(
        c2, p["conv2_b"], _round_up(5 * 5 * 16, LANE), _round_up(32, LANE))
    # fc1: PyTorch flattens NCHW -> (C, H, W); our NHWC flatten is (H, W, C),
    # so re-permute the 800 input features once here.
    f1 = p["fc1_w"].reshape(120, 32, 5, 5).transpose(0, 2, 3, 1).reshape(120, 800)
    out["fc1_w"], out["fc1_b"] = _prep_dense(
        f1, p["fc1_b"], _round_up(800, LANE), _round_up(120, LANE))
    out["fc2_w"], out["fc2_b"] = _prep_dense(
        p["fc2_w"], p["fc2_b"], _round_up(120, LANE), _round_up(84, LANE))
    out["fc3_w"], out["fc3_b"] = _prep_dense(
        p["fc3_w"], p["fc3_b"], _round_up(84, LANE), _round_up(10, LANE))
    return out


# ---------------------------------------------------------------------------
# LeNet forward
# ---------------------------------------------------------------------------
def lenet_forward(params, x):
    # x: (N, 3, 32, 32) NCHW, like the PyTorch module.  Go channels-last +
    # bf16 once up front; everything downstream stays NHWC/bf16 until fc3.
    x = x.transpose(0, 2, 3, 1).astype(COMPUTE_DTYPE)            # (N, 32, 32, 3)
    x = conv_relu_pool(x, params["conv1_w"], params["conv1_b"], oc=16)  # (N,14,14,16)
    x = conv_relu_pool(x, params["conv2_w"], params["conv2_b"], oc=32)  # (N,5,5,32)
    n = x.shape[0]
    x = x.reshape(n, 5 * 5 * 32)                                 # (N, 800), (h,w,c) order
    k1p = params["fc1_w"].shape[0]
    x = jnp.pad(x, ((0, 0), (0, k1p - x.shape[1])))              # (N, 896)
    y = pallas_fused_fc(x,
                        params["fc1_w"], params["fc1_b"],
                        params["fc2_w"], params["fc2_b"],
                        params["fc3_w"], params["fc3_b"])        # (N, 128) f32
    return y[:, :10]                                             # (N, 10)


if __name__ == "__main__":
    key = jax.random.PRNGKey(0)
    k_x, k_p = jax.random.split(key)
    # LeNet's fc1 (32*5*5) forces a 32x32 spatial input (CIFAR-10 size).
    x = jax.random.normal(k_x, (2, 3, 32, 32), dtype=jnp.float32)
    params = prepare_params(init_params(k_p))   # one-time layout prep

    out = jax.jit(lenet_forward)(params, x)
    out = jax.block_until_ready(out)
    assert out.shape == (2, 10) and out.dtype == jnp.float32
    print("KERNEL_OK")
</pallas_src>

<mosaic_0001>
module attributes {stable_mosaic.version = 11 : i64} {
  func.func @_conv_pool_kernel(%arg0: i32, %arg1: memref<4x208x128xbf16, #tpu.memory_space<vmem>>, %arg2: memref<128x128xbf16, #tpu.memory_space<vmem>>, %arg3: memref<1x128xf32, #tpu.memory_space<vmem>>, %arg4: memref<208x128xbf16, #tpu.memory_space<vmem>>) attributes {dimension_semantics = [#tpu.dimension_semantics<parallel>], iteration_bounds = array<i64: 2>, scalar_prefetch = 0 : i64, scratch_operands = 0 : i64, tpu.core_type = #tpu.core_type<tc>, window_params = [{transform_indices = @transform_0, window_bounds = array<i64: 4, 208, 128>}, {pipeline_mode = #tpu.pipeline_mode<synchronous>, transform_indices = @transform_1, window_bounds = array<i64: 128, 128>}, {pipeline_mode = #tpu.pipeline_mode<synchronous>, transform_indices = @transform_2, window_bounds = array<i64: 1, 128>}, {transform_indices = @transform_3, window_bounds = array<i64: 208, 128>}]} {
    %c0 = arith.constant 0 : index
    %c0_0 = arith.constant 0 : index
    %0 = vector.load %arg2[%c0, %c0_0] : memref<128x128xbf16, #tpu.memory_space<vmem>>, vector<128x128xbf16>
    %c0_1 = arith.constant 0 : index
    %c0_2 = arith.constant 0 : index
    %1 = vector.load %arg3[%c0_1, %c0_2] : memref<1x128xf32, #tpu.memory_space<vmem>>, vector<1x128xf32>
    %c0_3 = arith.constant 0 : index
    %c0_4 = arith.constant 0 : index
    %c0_5 = arith.constant 0 : index
    %2 = vector.load %arg1[%c0_3, %c0_4, %c0_5] : memref<4x208x128xbf16, #tpu.memory_space<vmem>>, vector<1x208x128xbf16>
    %3 = vector.shape_cast %2 : vector<1x208x128xbf16> to vector<208x128xbf16>
    %cst = arith.constant dense<0.000000e+00> : vector<208x128xf32>
    %4 = tpu.matmul %3, %0, %cst {dimension_numbers = #tpu.dot_dimension_numbers<[1], [0], [0], [1], [0, 0, 1, 1], [], []>} : vector<208x128xbf16>, vector<128x128xbf16>, vector<208x128xf32> -> vector<208x128xf32>
    %5 = vector.broadcast %1 : vector<1x128xf32> to vector<208x128xf32>
    %6 = arith.addf %4, %5 : vector<208x128xf32>
    %cst_6 = arith.constant 0.000000e+00 : f32
    %7 = vector.broadcast %cst_6 : f32 to vector<208x128xf32>
    %8 = arith.maximumf %6, %7 : vector<208x128xf32>
    %c1 = arith.constant 1 : index
    %c0_7 = arith.constant 0 : index
    %c0_8 = arith.constant 0 : index
    %9 = vector.load %arg1[%c1, %c0_7, %c0_8] : memref<4x208x128xbf16, #tpu.memory_space<vmem>>, vector<1x208x128xbf16>
    %10 = vector.shape_cast %9 : vector<1x208x128xbf16> to vector<208x128xbf16>
    %cst_9 = arith.constant dense<0.000000e+00> : vector<208x128xf32>
    %11 = tpu.matmul %10, %0, %cst_9 {dimension_numbers = #tpu.dot_dimension_numbers<[1], [0], [0], [1], [0, 0, 1, 1], [], []>} : vector<208x128xbf16>, vector<128x128xbf16>, vector<208x128xf32> -> vector<208x128xf32>
    %12 = vector.broadcast %1 : vector<1x128xf32> to vector<208x128xf32>
    %13 = arith.addf %11, %12 : vector<208x128xf32>
    %cst_10 = arith.constant 0.000000e+00 : f32
    %14 = vector.broadcast %cst_10 : f32 to vector<208x128xf32>
    %15 = arith.maximumf %13, %14 : vector<208x128xf32>
    %16 = arith.maximumf %8, %15 : vector<208x128xf32>
    %c2 = arith.constant 2 : index
    %c0_11 = arith.constant 0 : index
    %c0_12 = arith.constant 0 : index
    %17 = vector.load %arg1[%c2, %c0_11, %c0_12] : memref<4x208x128xbf16, #tpu.memory_space<vmem>>, vector<1x208x128xbf16>
    %18 = vector.shape_cast %17 : vector<1x208x128xbf16> to vector<208x128xbf16>
    %cst_13 = arith.constant dense<0.000000e+00> : vector<208x128xf32>
    %19 = tpu.matmul %18, %0, %cst_13 {dimension_numbers = #tpu.dot_dimension_numbers<[1], [0], [0], [1], [0, 0, 1, 1], [], []>} : vector<208x128xbf16>, vector<128x128xbf16>, vector<208x128xf32> -> vector<208x128xf32>
    %20 = vector.broadcast %1 : vector<1x128xf32> to vector<208x128xf32>
    %21 = arith.addf %19, %20 : vector<208x128xf32>
    %cst_14 = arith.constant 0.000000e+00 : f32
    %22 = vector.broadcast %cst_14 : f32 to vector<208x128xf32>
    %23 = arith.maximumf %21, %22 : vector<208x128xf32>
    %24 = arith.maximumf %16, %23 : vector<208x128xf32>
    %c3 = arith.constant 3 : index
    %c0_15 = arith.constant 0 : index
    %c0_16 = arith.constant 0 : index
    %25 = vector.load %arg1[%c3, %c0_15, %c0_16] : memref<4x208x128xbf16, #tpu.memory_space<vmem>>, vector<1x208x128xbf16>
    %26 = vector.shape_cast %25 : vector<1x208x128xbf16> to vector<208x128xbf16>
    %cst_17 = arith.constant dense<0.000000e+00> : vector<208x128xf32>
    %27 = tpu.matmul %26, %0, %cst_17 {dimension_numbers = #tpu.dot_dimension_numbers<[1], [0], [0], [1], [0, 0, 1, 1], [], []>} : vector<208x128xbf16>, vector<128x128xbf16>, vector<208x128xf32> -> vector<208x128xf32>
    %28 = vector.broadcast %1 : vector<1x128xf32> to vector<208x128xf32>
    %29 = arith.addf %27, %28 : vector<208x128xf32>
    %cst_18 = arith.constant 0.000000e+00 : f32
    %30 = vector.broadcast %cst_18 : f32 to vector<208x128xf32>
    %31 = arith.maximumf %29, %30 : vector<208x128xf32>
    %32 = arith.maximumf %24, %31 : vector<208x128xf32>
    %33 = arith.truncf %32 : vector<208x128xf32> to vector<208x128xbf16>
    %c0_19 = arith.constant 0 : index
    %c0_20 = arith.constant 0 : index
    %34 = vector.load %arg4[%c0_19, %c0_20] : memref<208x128xbf16, #tpu.memory_space<vmem>>, vector<208x128xbf16>
    tpu.vector_store %arg4[%c0_19, %c0_20], %33 {strides = array<i32>} : memref<208x128xbf16, #tpu.memory_space<vmem>>, vector<208x128xbf16>,
    return
  }
  func.func @transform_0(%arg0: i32) -> (i32, i32, i32) {
    %c0_i32 = arith.constant 0 : i32
    %c0_i32_0 = arith.constant 0 : i32
    %c0_i32_1 = arith.constant 0 : i32
    return %c0_i32, %arg0, %c0_i32_0 : i32, i32, i32
  }
  func.func @transform_1(%arg0: i32) -> (i32, i32) {
    %c0_i32 = arith.constant 0 : i32
    %c0_i32_0 = arith.constant 0 : i32
    %c0_i32_1 = arith.constant 0 : i32
    return %c0_i32, %c0_i32_0 : i32, i32
  }
  func.func @transform_2(%arg0: i32) -> (i32, i32) {
    %c0_i32 = arith.constant 0 : i32
    %c0_i32_0 = arith.constant 0 : i32
    %c0_i32_1 = arith.constant 0 : i32
    return %c0_i32, %c0_i32_0 : i32, i32
  }
  func.func @transform_3(%arg0: i32) -> (i32, i32) {
    %c0_i32 = arith.constant 0 : i32
    %c0_i32_0 = arith.constant 0 : i32
    return %arg0, %c0_i32 : i32, i32
  }
}

module attributes {stable_mosaic.version = 11 : i64} {
  func.func @_conv_pool_kernel(%arg0: i32, %arg1: memref<4x32x512xbf16, #tpu.memory_space<vmem>>, %arg2: memref<512x128xbf16, #tpu.memory_space<vmem>>, %arg3: memref<1x128xf32, #tpu.memory_space<vmem>>, %arg4: memref<32x128xbf16, #tpu.memory_space<vmem>>) attributes {dimension_semantics = [#tpu.dimension_semantics<parallel>], iteration_bounds = array<i64: 2>, scalar_prefetch = 0 : i64, scratch_operands = 0 : i64, tpu.core_type = #tpu.core_type<tc>, window_params = [{transform_indices = @transform_0, window_bounds = array<i64: 4, 32, 512>}, {pipeline_mode = #tpu.pipeline_mode<synchronous>, transform_indices = @transform_1, window_bounds = array<i64: 512, 128>}, {pipeline_mode = #tpu.pipeline_mode<synchronous>, transform_indices = @transform_2, window_bounds = array<i64: 1, 128>}, {transform_indices = @transform_3, window_bounds = array<i64: 32, 128>}]} {
    %c0 = arith.constant 0 : index
    %c0_0 = arith.constant 0 : index
    %0 = vector.load %arg2[%c0, %c0_0] : memref<512x128xbf16, #tpu.memory_space<vmem>>, vector<512x128xbf16>
    %c0_1 = arith.constant 0 : index
    %c0_2 = arith.constant 0 : index
    %1 = vector.load %arg3[%c0_1, %c0_2] : memref<1x128xf32, #tpu.memory_space<vmem>>, vector<1x128xf32>
    %c0_3 = arith.constant 0 : index
    %c0_4 = arith.constant 0 : index
    %c0_5 = arith.constant 0 : index
    %2 = vector.load %arg1[%c0_3, %c0_4, %c0_5] : memref<4x32x512xbf16, #tpu.memory_space<vmem>>, vector<1x32x512xbf16>
    %3 = vector.shape_cast %2 : vector<1x32x512xbf16> to vector<32x512xbf16>
    %cst = arith.constant dense<0.000000e+00> : vector<32x128xf32>
    %4 = tpu.matmul %3, %0, %cst {dimension_numbers = #tpu.dot_dimension_numbers<[1], [0], [0], [1], [0, 0, 1, 1], [], []>} : vector<32x512xbf16>, vector<512x128xbf16>, vector<32x128xf32> -> vector<32x128xf32>
    %5 = vector.broadcast %1 : vector<1x128xf32> to vector<32x128xf32>
    %6 = arith.addf %4, %5 : vector<32x128xf32>
    %cst_6 = arith.constant 0.000000e+00 : f32
    %7 = vector.broadcast %cst_6 : f32 to vector<32x128xf32>
    %8 = arith.maximumf %6, %7 : vector<32x128xf32>
    %c1 = arith.constant 1 : index
    %c0_7 = arith.constant 0 : index
    %c0_8 = arith.constant 0 : index
    %9 = vector.load %arg1[%c1, %c0_7, %c0_8] : memref<4x32x512xbf16, #tpu.memory_space<vmem>>, vector<1x32x512xbf16>
    %10 = vector.shape_cast %9 : vector<1x32x512xbf16> to vector<32x512xbf16>
    %cst_9 = arith.constant dense<0.000000e+00> : vector<32x128xf32>
    %11 = tpu.matmul %10, %0, %cst_9 {dimension_numbers = #tpu.dot_dimension_numbers<[1], [0], [0], [1], [0, 0, 1, 1], [], []>} : vector<32x512xbf16>, vector<512x128xbf16>, vector<32x128xf32> -> vector<32x128xf32>
    %12 = vector.broadcast %1 : vector<1x128xf32> to vector<32x128xf32>
    %13 = arith.addf %11, %12 : vector<32x128xf32>
    %cst_10 = arith.constant 0.000000e+00 : f32
    %14 = vector.broadcast %cst_10 : f32 to vector<32x128xf32>
    %15 = arith.maximumf %13, %14 : vector<32x128xf32>
    %16 = arith.maximumf %8, %15 : vector<32x128xf32>
    %c2 = arith.constant 2 : index
    %c0_11 = arith.constant 0 : index
    %c0_12 = arith.constant 0 : index
    %17 = vector.load %arg1[%c2, %c0_11, %c0_12] : memref<4x32x512xbf16, #tpu.memory_space<vmem>>, vector<1x32x512xbf16>
    %18 = vector.shape_cast %17 : vector<1x32x512xbf16> to vector<32x512xbf16>
    %cst_13 = arith.constant dense<0.000000e+00> : vector<32x128xf32>
    %19 = tpu.matmul %18, %0, %cst_13 {dimension_numbers = #tpu.dot_dimension_numbers<[1], [0], [0], [1], [0, 0, 1, 1], [], []>} : vector<32x512xbf16>, vector<512x128xbf16>, vector<32x128xf32> -> vector<32x128xf32>
    %20 = vector.broadcast %1 : vector<1x128xf32> to vector<32x128xf32>
    %21 = arith.addf %19, %20 : vector<32x128xf32>
    %cst_14 = arith.constant 0.000000e+00 : f32
    %22 = vector.broadcast %cst_14 : f32 to vector<32x128xf32>
    %23 = arith.maximumf %21, %22 : vector<32x128xf32>
    %24 = arith.maximumf %16, %23 : vector<32x128xf32>
    %c3 = arith.constant 3 : index
    %c0_15 = arith.constant 0 : index
    %c0_16 = arith.constant 0 : index
    %25 = vector.load %arg1[%c3, %c0_15, %c0_16] : memref<4x32x512xbf16, #tpu.memory_space<vmem>>, vector<1x32x512xbf16>
    %26 = vector.shape_cast %25 : vector<1x32x512xbf16> to vector<32x512xbf16>
    %cst_17 = arith.constant dense<0.000000e+00> : vector<32x128xf32>
    %27 = tpu.matmul %26, %0, %cst_17 {dimension_numbers = #tpu.dot_dimension_numbers<[1], [0], [0], [1], [0, 0, 1, 1], [], []>} : vector<32x512xbf16>, vector<512x128xbf16>, vector<32x128xf32> -> vector<32x128xf32>
    %28 = vector.broadcast %1 : vector<1x128xf32> to vector<32x128xf32>
    %29 = arith.addf %27, %28 : vector<32x128xf32>
    %cst_18 = arith.constant 0.000000e+00 : f32
    %30 = vector.broadcast %cst_18 : f32 to vector<32x128xf32>
    %31 = arith.maximumf %29, %30 : vector<32x128xf32>
    %32 = arith.maximumf %24, %31 : vector<32x128xf32>
    %33 = arith.truncf %32 : vector<32x128xf32> to vector<32x128xbf16>
    %c0_19 = arith.constant 0 : index
    %c0_20 = arith.constant 0 : index
    %34 = vector.load %arg4[%c0_19, %c0_20] : memref<32x128xbf16, #tpu.memory_space<vmem>>, vector<32x128xbf16>
    tpu.vector_store %arg4[%c0_19, %c0_20], %33 {strides = array<i32>} : memref<32x128xbf16, #tpu.memory_space<vmem>>, vector<32x128xbf16>,
    return
  }
  func.func @transform_0(%arg0: i32) -> (i32, i32, i32) {
    %c0_i32 = arith.constant 0 : i32
    %c0_i32_0 = arith.constant 0 : i32
    %c0_i32_1 = arith.constant 0 : i32
    return %c0_i32, %arg0, %c0_i32_0 : i32, i32, i32
  }
  func.func @transform_1(%arg0: i32) -> (i32, i32) {
    %c0_i32 = arith.constant 0 : i32
    %c0_i32_0 = arith.constant 0 : i32
    %c0_i32_1 = arith.constant 0 : i32
    return %c0_i32, %c0_i32_0 : i32, i32
  }
  func.func @transform_2(%arg0: i32) -> (i32, i32) {
    %c0_i32 = arith.constant 0 : i32
    %c0_i32_0 = arith.constant 0 : i32
    %c0_i32_1 = arith.constant 0 : i32
    return %c0_i32, %c0_i32_0 : i32, i32
  }
  func.func @transform_3(%arg0: i32) -> (i32, i32) {
    %c0_i32 = arith.constant 0 : i32
    %c0_i32_0 = arith.constant 0 : i32
    return %arg0, %c0_i32 : i32, i32
  }
}

module attributes {stable_mosaic.version = 11 : i64} {
  func.func @_fused_fc_kernel(%arg0: i32, %arg1: memref<16x896xbf16, #tpu.memory_space<vmem>>, %arg2: memref<896x128xbf16, #tpu.memory_space<vmem>>, %arg3: memref<1x128xf32, #tpu.memory_space<vmem>>, %arg4: memref<128x128xbf16, #tpu.memory_space<vmem>>, %arg5: memref<1x128xf32, #tpu.memory_space<vmem>>, %arg6: memref<128x128xbf16, #tpu.memory_space<vmem>>, %arg7: memref<1x128xf32, #tpu.memory_space<vmem>>, %arg8: memref<16x128xf32, #tpu.memory_space<vmem>>) attributes {dimension_semantics = [#tpu.dimension_semantics<parallel>], iteration_bounds = array<i64: 1>, scalar_prefetch = 0 : i64, scratch_operands = 0 : i64, tpu.core_type = #tpu.core_type<tc>, window_params = [{transform_indices = @transform_0, window_bounds = array<i64: 16, 896>}, {pipeline_mode = #tpu.pipeline_mode<synchronous>, transform_indices = @transform_1, window_bounds = array<i64: 896, 128>}, {pipeline_mode = #tpu.pipeline_mode<synchronous>, transform_indices = @transform_2, window_bounds = array<i64: 1, 128>}, {pipeline_mode = #tpu.pipeline_mode<synchronous>, transform_indices = @transform_3, window_bounds = array<i64: 128, 128>}, {pipeline_mode = #tpu.pipeline_mode<synchronous>, transform_indices = @transform_4, window_bounds = array<i64: 1, 128>}, {pipeline_mode = #tpu.pipeline_mode<synchronous>, transform_indices = @transform_5, window_bounds = array<i64: 128, 128>}, {pipeline_mode = #tpu.pipeline_mode<synchronous>, transform_indices = @transform_6, window_bounds = array<i64: 1, 128>}, {transform_indices = @transform_7, window_bounds = array<i64: 16, 128>}]} {
    %c0 = arith.constant 0 : index
    %c0_0 = arith.constant 0 : index
    %0 = vector.load %arg1[%c0, %c0_0] : memref<16x896xbf16, #tpu.memory_space<vmem>>, vector<16x896xbf16>
    %c0_1 = arith.constant 0 : index
    %c0_2 = arith.constant 0 : index
    %1 = vector.load %arg2[%c0_1, %c0_2] : memref<896x128xbf16, #tpu.memory_space<vmem>>, vector<896x128xbf16>
    %cst = arith.constant dense<0.000000e+00> : vector<16x128xf32>
    %2 = tpu.matmul %0, %1, %cst {dimension_numbers = #tpu.dot_dimension_numbers<[1], [0], [0], [1], [0, 0, 1, 1], [], []>} : vector<16x896xbf16>, vector<896x128xbf16>, vector<16x128xf32> -> vector<16x128xf32>
    %c0_3 = arith.constant 0 : index
    %c0_4 = arith.constant 0 : index
    %3 = vector.load %arg3[%c0_3, %c0_4] : memref<1x128xf32, #tpu.memory_space<vmem>>, vector<1x128xf32>
    %4 = vector.broadcast %3 : vector<1x128xf32> to vector<16x128xf32>
    %5 = arith.addf %2, %4 : vector<16x128xf32>
    %cst_5 = arith.constant 0.000000e+00 : f32
    %6 = vector.broadcast %cst_5 : f32 to vector<16x128xf32>
    %7 = arith.maximumf %5, %6 : vector<16x128xf32>
    %8 = arith.truncf %7 : vector<16x128xf32> to vector<16x128xbf16>
    %c0_6 = arith.constant 0 : index
    %c0_7 = arith.constant 0 : index
    %9 = vector.load %arg4[%c0_6, %c0_7] : memref<128x128xbf16, #tpu.memory_space<vmem>>, vector<128x128xbf16>
    %cst_8 = arith.constant dense<0.000000e+00> : vector<16x128xf32>
    %10 = tpu.matmul %8, %9, %cst_8 {dimension_numbers = #tpu.dot_dimension_numbers<[1], [0], [0], [1], [0, 0, 1, 1], [], []>} : vector<16x128xbf16>, vector<128x128xbf16>, vector<16x128xf32> -> vector<16x128xf32>
    %c0_9 = arith.constant 0 : index
    %c0_10 = arith.constant 0 : index
    %11 = vector.load %arg5[%c0_9, %c0_10] : memref<1x128xf32, #tpu.memory_space<vmem>>, vector<1x128xf32>
    %12 = vector.broadcast %11 : vector<1x128xf32> to vector<16x128xf32>
    %13 = arith.addf %10, %12 : vector<16x128xf32>
    %cst_11 = arith.constant 0.000000e+00 : f32
    %14 = vector.broadcast %cst_11 : f32 to vector<16x128xf32>
    %15 = arith.maximumf %13, %14 : vector<16x128xf32>
    %16 = arith.truncf %15 : vector<16x128xf32> to vector<16x128xbf16>
    %c0_12 = arith.constant 0 : index
    %c0_13 = arith.constant 0 : index
    %17 = vector.load %arg6[%c0_12, %c0_13] : memref<128x128xbf16, #tpu.memory_space<vmem>>, vector<128x128xbf16>
    %cst_14 = arith.constant dense<0.000000e+00> : vector<16x128xf32>
    %18 = tpu.matmul %16, %17, %cst_14 {dimension_numbers = #tpu.dot_dimension_numbers<[1], [0], [0], [1], [0, 0, 1, 1], [], []>} : vector<16x128xbf16>, vector<128x128xbf16>, vector<16x128xf32> -> vector<16x128xf32>
    %c0_15 = arith.constant 0 : index
    %c0_16 = arith.constant 0 : index
    %19 = vector.load %arg7[%c0_15, %c0_16] : memref<1x128xf32, #tpu.memory_space<vmem>>, vector<1x128xf32>
    %20 = vector.broadcast %19 : vector<1x128xf32> to vector<16x128xf32>
    %21 = arith.addf %18, %20 : vector<16x128xf32>
    %c0_17 = arith.constant 0 : index
    %c0_18 = arith.constant 0 : index
    %22 = vector.load %arg8[%c0_17, %c0_18] : memref<16x128xf32, #tpu.memory_space<vmem>>, vector<16x128xf32>
    tpu.vector_store %arg8[%c0_17, %c0_18], %21 {strides = array<i32>} : memref<16x128xf32, #tpu.memory_space<vmem>>, vector<16x128xf32>,
    return
  }
  func.func @transform_0(%arg0: i32) -> (i32, i32) {
    %c0_i32 = arith.constant 0 : i32
    %c0_i32_0 = arith.constant 0 : i32
    return %arg0, %c0_i32 : i32, i32
  }
  func.func @transform_1(%arg0: i32) -> (i32, i32) {
    %c0_i32 = arith.constant 0 : i32
    %c0_i32_0 = arith.constant 0 : i32
    %c0_i32_1 = arith.constant 0 : i32
    return %c0_i32, %c0_i32_0 : i32, i32
  }
  func.func @transform_2(%arg0: i32) -> (i32, i32) {
    %c0_i32 = arith.constant 0 : i32
    %c0_i32_0 = arith.constant 0 : i32
    %c0_i32_1 = arith.constant 0 : i32
    return %c0_i32, %c0_i32_0 : i32, i32
  }
  func.func @transform_3(%arg0: i32) -> (i32, i32) {
    %c0_i32 = arith.constant 0 : i32
    %c0_i32_0 = arith.constant 0 : i32
    %c0_i32_1 = arith.constant 0 : i32
    return %c0_i32, %c0_i32_0 : i32, i32
  }
  func.func @transform_4(%arg0: i32) -> (i32, i32) {
    %c0_i32 = arith.constant 0 : i32
    %c0_i32_0 = arith.constant 0 : i32
    %c0_i32_1 = arith.constant 0 : i32
    return %c0_i32, %c0_i32_0 : i32, i32
  }
  func.func @transform_5(%arg0: i32) -> (i32, i32) {
    %c0_i32 = arith.constant 0 : i32
    %c0_i32_0 = arith.constant 0 : i32
    %c0_i32_1 = arith.constant 0 : i32
    return %c0_i32, %c0_i32_0 : i32, i32
  }
  func.func @transform_6(%arg0: i32) -> (i32, i32) {
    %c0_i32 = arith.constant 0 : i32
    %c0_i32_0 = arith.constant 0 : i32
    %c0_i32_1 = arith.constant 0 : i32
    return %c0_i32, %c0_i32_0 : i32, i32
  }
  func.func @transform_7(%arg0: i32) -> (i32, i32) {
    %c0_i32 = arith.constant 0 : i32
    %c0_i32_0 = arith.constant 0 : i32
    return %arg0, %c0_i32 : i32, i32
  }
}

</mosaic_0001>

<bundles_post_ra>
// kernel: lenet_forward.3
= control target key start
LH: loop header
LB: loop body
LE: loop exit
PB: predicated region body
PF: predicated region fallthrough
CT: control target
= control target key end

     0   :  { %s2809_s12 = smov 0   ;;  %s2811_s13 = smov 0   ;;  %s3386_s0 = inlined_call_operand.vmem [shape: bf16[4,416,128], index: 0, kind: input, shape index: {}]   ;;  %s3387_s1 = inlined_call_operand.vmem [shape: bf16[128,128], index: 1, kind: input, shape index: {}]   ;;  %s3388_s2 = inlined_call_operand.vmem [shape: f32[1,128], index: 2, kind: input, shape index: {}]   ;;  %s3389_s3 = inlined_call_operand.vmem [shape: bf16[416,128], index: 3, kind: output, shape index: {}]  }
   0x1   :  { %s2813_s14 = smov 0  }
   0x2 LB: > { %s2040_s15 = sadd.s32 4294967295, %s2785_s14   ;;  %s2826_s16 = sadd.s32 1, %s2785_s14   ;;  %s2785_s14 = sphi %s2813_s14, %s3392_s14   ;;  %s2781_s13 = sphi %s2811_s13, %s3391_s13   ;;  %s2777_s12 = sphi %s2809_s12, %s3390_s12  }
   0x3   : > { %s17_s17 = ssub.s32 %s2785_s14, %s2826_s16  ;;  %s20_s18 = sadd.s32 1, %s2781_s13 }
   0x4   : > { %p18_p0 = scmp.eq.s32.totalorder %s17_s17, 0  ;;  %p27_p1 = scmp.ne.s32.totalorder %s2781_s13, %s2777_s12 }
   0x5   : > { %p28_p2 = scmp.eq.s32.totalorder %s2785_s14, 0  ;;  %p2043_p4 = scmp.ge.s32.totalorder %s2785_s14, 2 }
   0x6   : > { %s2835_s19 = scalar_select %p18_p0, %s2781_s13, %s20_s18  }
   0x7   : > { %p29_p3 = por %p28_p2, %p27_p1  ;;  %127 = sbr.rel (%p2043_p4) target bundleno = 45 (0x2d), region = 24 }
   0xe   : > { %130 = sbr.rel (!%p29_p3) target bundleno = 45 (0x2d), region = 28  ;;  %s132_s20 = sand.u32 (%p29_p3), 1, %s2781_s13  }
   0xf   : > { %s2214_s21 = smul.u32 (%p29_p3), 104, %s2785_s14 }
  0x10   : > { %s2674_s22 = smul.u32 (%p29_p3), 416, %s132_s20 }
  0x11   : > { %s2843_s25 = scalar_lea.vmem (%p29_p3), %s3386_s0, %s2214_s21 }
  0x12   : > { %v153_v0 = vld [vmem:[%s2843_s25] sm:$0xff] (%p29_p3)   ;;  %v157_v1 = vld [vmem:[%s2843_s25 + $0x8] sm:$0xff] (%p29_p3)   ;;  %v161_v2 = vld [vmem:[%s2843_s25 + $0x10] sm:$0xff] (%p29_p3)   ;;  %s2848_s26 = scalar_lea.vmem (%p29_p3), [#allocation2], %s2674_s22 }
  0x13   : > { %154 = vst [vmem:[%s2848_s26] sm:$0xff] (%p29_p3), %v153_v0   ;;  %158 = vst [vmem:[%s2848_s26 + $0x8] sm:$0xff] (%p29_p3), %v157_v1   ;;  %v165_v3 = vld [vmem:[%s2843_s25 + $0x18] sm:$0xff] (%p29_p3)   ;;  %v169_v4 = vld [vmem:[%s2843_s25 + $0x20] sm:$0xff] (%p29_p3)  }
  0x14   : > { %162 = vst [vmem:[%s2848_s26 + $0x10] sm:$0xff] (%p29_p3), %v161_v2   ;;  %v173_v5 = vld [vmem:[%s2843_s25 + $0x28] sm:$0xff] (%p29_p3)   ;;  %166 = vst [vmem:[%s2848_s26 + $0x18] sm:$0xff] (%p29_p3), %v165_v3   ;;  %v177_v6 = vld [vmem:[%s2843_s25 + $0x30] sm:$0xff] (%p29_p3)  }
  0x15   : > { %170 = vst [vmem:[%s2848_s26 + $0x20] sm:$0xff] %v169_v4   ;;  %174 = vst [vmem:[%s2848_s26 + $0x28] sm:$0xff] %v173_v5   ;;  %v181_v7 = vld [vmem:[%s2843_s25 + $0x38] sm:$0xff]   ;;  %v185_v8 = vld [vmem:[%s2843_s25 + $0x40] sm:$0xff]  }
  0x16   : > { %178 = vst [vmem:[%s2848_s26 + $0x30] sm:$0xff] %v177_v6   ;;  %182 = vst [vmem:[%s2848_s26 + $0x38] sm:$0xff] %v181_v7   ;;  %v189_v9 = vld [vmem:[%s2843_s25 + $0x48] sm:$0xff]   ;;  %v193_v10 = vld [vmem:[%s2843_s25 + $0x50] sm:$0xff]  }
  0x17   : > { %186 = vst [vmem:[%s2848_s26 + $0x40] sm:$0xff] %v185_v8   ;;  %v197_v11 = vld [vmem:[%s2843_s25 + $0x58] sm:$0xff]   ;;  %190 = vst [vmem:[%s2848_s26 + $0x48] sm:$0xff] %v189_v9   ;;  %v201_v12 = vld [vmem:[%s2843_s25 + $0x60] sm:$0xff]  }
  0x18   : > { %194 = vst [vmem:[%s2848_s26 + $0x50] sm:$0xff] %v193_v10   ;;  %198 = vst [vmem:[%s2848_s26 + $0x58] sm:$0xff] %v197_v11   ;;  %v205_v13 = vld [vmem:[%s2843_s25 + $0xd0] sm:$0xff]   ;;  %v209_v14 = vld [vmem:[%s2843_s25 + $0xd8] sm:$0xff]  }
  0x19   : > { %202 = vst [vmem:[%s2848_s26 + $0x60] sm:$0xff] %v201_v12   ;;  %206 = vst [vmem:[%s2848_s26 + $0x68] sm:$0xff] %v205_v13   ;;  %v213_v15 = vld [vmem:[%s2843_s25 + $0xe0] sm:$0xff]   ;;  %v217_v16 = vld [vmem:[%s2843_s25 + $0xe8] sm:$0xff]  }
  0x1a   : > { %210 = vst [vmem:[%s2848_s26 + $0x70] sm:$0xff] %v209_v14   ;;  %v221_v17 = vld [vmem:[%s2843_s25 + $0xf0] sm:$0xff]   ;;  %214 = vst [vmem:[%s2848_s26 + $0x78] sm:$0xff] %v213_v15   ;;  %v225_v18 = vld [vmem:[%s2843_s25 + $0xf8] sm:$0xff]  }
  0x1b   : > { %218 = vst [vmem:[%s2848_s26 + $0x80] sm:$0xff] %v217_v16   ;;  %222 = vst [vmem:[%s2848_s26 + $0x88] sm:$0xff] %v221_v17   ;;  %v229_v19 = vld [vmem:[%s2843_s25 + $0x100] sm:$0xff]   ;;  %v233_v20 = vld [vmem:[%s2843_s25 + $0x108] sm:$0xff]  }
  0x1c   : > { %226 = vst [vmem:[%s2848_s26 + $0x90] sm:$0xff] %v225_v18   ;;  %230 = vst [vmem:[%s2848_s26 + $0x98] sm:$0xff] %v229_v19   ;;  %v237_v21 = vld [vmem:[%s2843_s25 + $0x110] sm:$0xff]   ;;  %v241_v22 = vld [vmem:[%s2843_s25 + $0x118] sm:$0xff]  }
  0x1d   : > { %234 = vst [vmem:[%s2848_s26 + $0xa0] sm:$0xff] %v233_v20   ;;  %v245_v23 = vld [vmem:[%s2843_s25 + $0x120] sm:$0xff]   ;;  %238 = vst [vmem:[%s2848_s26 + $0xa8] sm:$0xff] %v237_v21   ;;  %v249_v24 = vld [vmem:[%s2843_s25 + $0x128] sm:$0xff]  }
  0x1e   : > { %242 = vst [vmem:[%s2848_s26 + $0xb0] sm:$0xff] %v241_v22   ;;  %246 = vst [vmem:[%s2848_s26 + $0xb8] sm:$0xff] %v245_v23   ;;  %v253_v25 = vld [vmem:[%s2843_s25 + $0x130] sm:$0xff]   ;;  %v257_v26 = vld [vmem:[%s2843_s25 + $0x1a0] sm:$0xff]  }
  0x1f   : > { %250 = vst [vmem:[%s2848_s26 + $0xc0] sm:$0xff] %v249_v24   ;;  %254 = vst [vmem:[%s2848_s26 + $0xc8] sm:$0xff] %v253_v25   ;;  %v261_v27 = vld [vmem:[%s2843_s25 + $0x1a8] sm:$0xff]   ;;  %v265_v28 = vld [vmem:[%s2843_s25 + $0x1b0] sm:$0xff]  }
  0x20   : > { %258 = vst [vmem:[%s2848_s26 + $0xd0] sm:$0xff] %v257_v26   ;;  %v269_v29 = vld [vmem:[%s2843_s25 + $0x1b8] sm:$0xff]   ;;  %262 = vst [vmem:[%s2848_s26 + $0xd8] sm:$0xff] %v261_v27   ;;  %v273_v30 = vld [vmem:[%s2843_s25 + $0x1c0] sm:$0xff]  }
  0x21   : > { %266 = vst [vmem:[%s2848_s26 + $0xe0] sm:$0xff] %v265_v28   ;;  %270 = vst [vmem:[%s2848_s26 + $0xe8] sm:$0xff] %v269_v29   ;;  %v277_v31 = vld [vmem:[%s2843_s25 + $0x1c8] sm:$0xff]   ;;  %v281_v32 = vld [vmem:[%s2843_s25 + $0x1d0] sm:$0xff]  }
  0x22   : > { %274 = vst [vmem:[%s2848_s26 + $0xf0] sm:$0xff] %v273_v30   ;;  %278 = vst [vmem:[%s2848_s26 + $0xf8] sm:$0xff] %v277_v31   ;;  %v285_v33 = vld [vmem:[%s2843_s25 + $0x1d8] sm:$0xff]   ;;  %v289_v34 = vld [vmem:[%s2843_s25 + $0x1e0] sm:$0xff]  }
  0x23   : > { %282 = vst [vmem:[%s2848_s26 + $0x100] sm:$0xff] %v281_v32   ;;  %v293_v35 = vld [vmem:[%s2843_s25 + $0x1e8] sm:$0xff]   ;;  %286 = vst [vmem:[%s2848_s26 + $0x108] sm:$0xff] %v285_v33   ;;  %v297_v36 = vld [vmem:[%s2843_s25 + $0x1f0] sm:$0xff]  }
  0x24   : > { %290 = vst [vmem:[%s2848_s26 + $0x110] sm:$0xff] %v289_v34   ;;  %294 = vst [vmem:[%s2848_s26 + $0x118] sm:$0xff] %v293_v35   ;;  %v301_v37 = vld [vmem:[%s2843_s25 + $0x1f8] sm:$0xff]   ;;  %v305_v38 = vld [vmem:[%s2843_s25 + $0x200] sm:$0xff]  }
  0x25   : > { %298 = vst [vmem:[%s2848_s26 + $0x120] sm:$0xff] %v297_v36   ;;  %302 = vst [vmem:[%s2848_s26 + $0x128] sm:$0xff] %v301_v37   ;;  %v309_v39 = vld [vmem:[%s2843_s25 + $0x270] sm:$0xff]   ;;  %v313_v40 = vld [vmem:[%s2843_s25 + $0x278] sm:$0xff]  }
  0x26   : > { %306 = vst [vmem:[%s2848_s26 + $0x130] sm:$0xff] %v305_v38   ;;  %v317_v41 = vld [vmem:[%s2843_s25 + $0x280] sm:$0xff]   ;;  %310 = vst [vmem:[%s2848_s26 + $0x138] sm:$0xff] %v309_v39   ;;  %v321_v42 = vld [vmem:[%s2843_s25 + $0x288] sm:$0xff]  }
  0x27   : > { %314 = vst [vmem:[%s2848_s26 + $0x140] sm:$0xff] %v313_v40   ;;  %318 = vst [vmem:[%s2848_s26 + $0x148] sm:$0xff] %v317_v41   ;;  %v325_v43 = vld [vmem:[%s2843_s25 + $0x290] sm:$0xff]   ;;  %v329_v44 = vld [vmem:[%s2843_s25 + $0x298] sm:$0xff]  }
  0x28   : > { %322 = vst [vmem:[%s2848_s26 + $0x150] sm:$0xff] %v321_v42   ;;  %326 = vst [vmem:[%s2848_s26 + $0x158] sm:$0xff] %v325_v43   ;;  %v333_v45 = vld [vmem:[%s2843_s25 + $0x2a0] sm:$0xff]   ;;  %v337_v46 = vld [vmem:[%s2843_s25 + $0x2a8] sm:$0xff]  }
  0x29   : > { %330 = vst [vmem:[%s2848_s26 + $0x160] sm:$0xff] %v329_v44   ;;  %v341_v47 = vld [vmem:[%s2843_s25 + $0x2b0] sm:$0xff]   ;;  %334 = vst [vmem:[%s2848_s26 + $0x168] sm:$0xff] %v333_v45   ;;  %v345_v48 = vld [vmem:[%s2843_s25 + $0x2b8] sm:$0xff]  }
  0x2a   : > { %338 = vst [vmem:[%s2848_s26 + $0x170] sm:$0xff] %v337_v46   ;;  %342 = vst [vmem:[%s2848_s26 + $0x178] sm:$0xff] %v341_v47   ;;  %v349_v49 = vld [vmem:[%s2843_s25 + $0x2c0] sm:$0xff]   ;;  %v353_v50 = vld [vmem:[%s2843_s25 + $0x2c8] sm:$0xff]  }
  0x2b   : > { %346 = vst [vmem:[%s2848_s26 + $0x180] sm:$0xff] %v345_v48   ;;  %350 = vst [vmem:[%s2848_s26 + $0x188] sm:$0xff] %v349_v49   ;;  %v357_v51 = vld [vmem:[%s2843_s25 + $0x2d0] sm:$0xff]  }
  0x2c   : > { %354 = vst [vmem:[%s2848_s26 + $0x190] sm:$0xff] %v353_v50   ;;  %358 = vst [vmem:[%s2848_s26 + $0x198] sm:$0xff] %v357_v51  }
  0x2d PF: > { %p2045_p5 = scmp.ge.s32.totalorder %s2785_s14, 1  ;;  %p590_p6 = scmp.lt.s32.totalorder %s2785_s14, 3 }
  0x2f   : > { %p591_p7 = pnand %p2045_p5, %p590_p6 }
  0x30   : > { %v2702_v52 = vld [vmem:[%s3387_s1] sm:$0xff] (!%p591_p7)   ;;  %v2787_v53 = vmov (!%p591_p7), 0.0   ;;  %v2703_v54 = vld [vmem:[%s3387_s1 + $0x8] sm:$0xff] (!%p591_p7)   ;;  %s597_s4 = sand.u32 (!%p591_p7), 1, %s2777_s12   ;;  %vm2788_vm0 = vmmov (!%p591_p7), 0   ;;  %v2704_v55 = vld [vmem:[%s3387_s1 + $0x10] sm:$0xff] (!%p591_p7)  }
  0x31   : > { %594 = sbr.rel (%p591_p7) target bundleno = 506 (0x1fa), region = 69  ;;  %2402 = vmatprep.subr.bf16.mxu0 (!%p591_p7), %v2787_v53  ;;  %2470 = vmatprep.subr.bf16.mxu1 (!%p591_p7), %v2787_v53  ;;  %v2705_v56 = vld [vmem:[%s3387_s1 + $0x18] sm:$0xff] (!%p591_p7)   ;;  %v2706_v57 = vld [vmem:[%s3387_s1 + $0x20] sm:$0xff] (!%p591_p7)   ;;  %v2707_v58 = vld [vmem:[%s3387_s1 + $0x28] sm:$0xff] (!%p591_p7)  }
  0x32   : > { %2403 = vmatpush3.bf16.msra.mxu0 (!%p591_p7), %v2702_v52  ;;  %2471 = vmatpush3.bf16.msra.mxu1 (!%p591_p7), %v2702_v52  ;;  %s2675_s5 = smul.u32 (!%p591_p7), 416, %s597_s4  ;;  %v2708_v59 = vld [vmem:[%s3387_s1 + $0x30] sm:$0xff] (!%p591_p7)   ;;  %v2709_v60 = vld [vmem:[%s3387_s1 + $0x38] sm:$0xff] (!%p591_p7)   ;;  %v3171_v49 = vld [vmem:[%s3388_s2] ss:$0 sm:$0xff] (!%p591_p7) }
  0x33   : > { %2404 = vmatprep.subr.bf16.mxu0 (!%p591_p7), %v2787_v53  ;;  %2472 = vmatprep.subr.bf16.mxu1 (!%p591_p7), %v2787_v53  ;;  %s621_s26 = smul.u32 (!%p591_p7), 26, %s2040_s15 }
  0x34   : > { %2418 = vmatprep.mubr.msk.bf16.mxu0 (!%p591_p7), %vm2788_vm0, %v2787_v53  ;;  %2486 = vmatprep.mubr.msk.bf16.mxu1 (!%p591_p7), %vm2788_vm0, %v2787_v53  ;;  %s2973_s8 = scalar_lea.vmem (!%p591_p7), [#allocation2], %s2675_s5 }
  0x35   : > { %v2710_v61 = vld [vmem:[%s2973_s8] sm:$0xff] (!%p591_p7)   ;;  %v2711_v62 = vld [vmem:[%s2973_s8 + $0x68] sm:$0xff] (!%p591_p7)   ;;  %v2713_v0 = vld [vmem:[%s2973_s8 + $0x70] sm:$0xff] (!%p591_p7)   ;;  %p622_p8 = scmp.lt.s32.totalorder (!%p591_p7), %s621_s26, 51 }
  0x36   : > { %2405 = vmatpush3.bf16.msra.mxu0 (!%p591_p7), %v2703_v54  ;;  %2473 = vmatpush3.bf16.msra.mxu1 (!%p591_p7), %v2703_v54  ;;  %v2712_v63 = vld [vmem:[%s2973_s8 + $0x8] sm:$0xff] (!%p591_p7)   ;;  %v2714_v1 = vld [vmem:[%s2973_s8 + $0x10] sm:$0xff] (!%p591_p7)   ;;  %v2715_v2 = vld [vmem:[%s2973_s8 + $0x78] sm:$0xff] (!%p591_p7)  }
  0x37   : > { %2406 = vmatprep.subr.bf16.mxu0 (!%p591_p7), %v2787_v53  ;;  %2474 = vmatprep.subr.bf16.mxu1 (!%p591_p7), %v2787_v53  ;;  %v2716_v3 = vld [vmem:[%s2973_s8 + $0x18] sm:$0xff] (!%p591_p7)   ;;  %v2717_v4 = vld [vmem:[%s2973_s8 + $0x80] sm:$0xff] (!%p591_p7)   ;;  %v2719_v6 = vld [vmem:[%s2973_s8 + $0x88] sm:$0xff] (!%p591_p7)  }
  0x38   : > { %v2718_v5 = vld [vmem:[%s2973_s8 + $0x20] sm:$0xff]   ;;  %v2720_v7 = vld [vmem:[%s2973_s8 + $0x28] sm:$0xff]   ;;  %v2721_v8 = vld [vmem:[%s2973_s8 + $0x90] sm:$0xff]   ;;  %s3394_s26 = smov (!%p622_p8, %s621_s26), 51 }
  0x39   : > { %v2722_v9 = vld [vmem:[%s2973_s8 + $0x30] sm:$0xff]   ;;  %v2723_v10 = vld [vmem:[%s2973_s8 + $0x98] sm:$0xff]   ;;  %v2725_v12 = vld [vmem:[%s2973_s8 + $0xa0] sm:$0xff]   ;;  %s2046_s14 = sshll.u32 %s3394_s26, 2 }
  0x3a   : > { %2407 = vmatpush3.bf16.msra.mxu0 %v2704_v55  ;;  %2475 = vmatpush3.bf16.msra.mxu1 %v2704_v55  ;;  %v2724_v11 = vld [vmem:[%s2973_s8 + $0x38] sm:$0xff]   ;;  %v2726_v13 = vld [vmem:[%s2973_s8 + $0x40] sm:$0xff]   ;;  %v2727_v14 = vld [vmem:[%s2973_s8 + $0xa8] sm:$0xff]   ;;  %s3290_s28 = scalar_lea.vmem %s3389_s3, %s2046_s14 }
  0x3b   : > { %2408 = vmatprep.subr.bf16.mxu0 %v2787_v53  ;;  %2476 = vmatprep.subr.bf16.mxu1 %v2787_v53  ;;  %v2728_v15 = vld [vmem:[%s2973_s8 + $0x48] sm:$0xff]   ;;  %v2729_v16 = vld [vmem:[%s2973_s8 + $0xb0] sm:$0xff]   ;;  %v2731_v18 = vld [vmem:[%s2973_s8 + $0xb8] sm:$0xff]  }
  0x3c   : > { %v2730_v17 = vld [vmem:[%s2973_s8 + $0x50] sm:$0xff]   ;;  %v2732_v19 = vld [vmem:[%s2973_s8 + $0x58] sm:$0xff]   ;;  %v2733_v20 = vld [vmem:[%s2973_s8 + $0xc0] sm:$0xff]  }
  0x3d   : > { %v2734_v21 = vld [vmem:[%s2973_s8 + $0x60] sm:$0xff]   ;;  %v2735_v22 = vld [vmem:[%s2973_s8 + $0xc8] sm:$0xff]   ;;  %v2736_v23 = vld [vmem:[%s2973_s8 + $0xd0] sm:$0xff]  }
  0x3e   : > { %2409 = vmatpush3.bf16.msra.mxu0 %v2705_v56  ;;  %2477 = vmatpush3.bf16.msra.mxu1 %v2705_v56  ;;  %v2737_v24 = vld [vmem:[%s2973_s8 + $0x138] sm:$0xff]   ;;  %v2739_v26 = vld [vmem:[%s2973_s8 + $0x140] sm:$0xff]   ;;  %v2741_v28 = vld [vmem:[%s2973_s8 + $0x148] sm:$0xff]  }
  0x3f   : > { %2410 = vmatprep.subr.bf16.mxu0 %v2787_v53  ;;  %2478 = vmatprep.subr.bf16.mxu1 %v2787_v53  ;;  %v2738_v25 = vld [vmem:[%s2973_s8 + $0xd8] sm:$0xff]   ;;  %v2740_v27 = vld [vmem:[%s2973_s8 + $0xe0] sm:$0xff]   ;;  %v2742_v29 = vld [vmem:[%s2973_s8 + $0xe8] sm:$0xff]  }
  0x40   : > { %v2743_v30 = vld [vmem:[%s2973_s8 + $0x150] sm:$0xff]   ;;  %v2745_v32 = vld [vmem:[%s2973_s8 + $0x158] sm:$0xff]   ;;  %v2747_v34 = vld [vmem:[%s2973_s8 + $0x160] sm:$0xff]  }
  0x41   : > { %v2744_v31 = vld [vmem:[%s2973_s8 + $0xf0] sm:$0xff]   ;;  %v2746_v33 = vld [vmem:[%s2973_s8 + $0xf8] sm:$0xff]   ;;  %v2748_v35 = vld [vmem:[%s2973_s8 + $0x100] sm:$0xff]  }
  0x42   : > { %2411 = vmatpush3.bf16.msra.mxu0 %v2706_v57  ;;  %2479 = vmatpush3.bf16.msra.mxu1 %v2706_v57  ;;  %v2749_v36 = vld [vmem:[%s2973_s8 + $0x168] sm:$0xff]   ;;  %v2751_v38 = vld [vmem:[%s2973_s8 + $0x170] sm:$0xff]   ;;  %v2753_v40 = vld [vmem:[%s2973_s8 + $0x178] sm:$0xff]  }
  0x43   : > { %2412 = vmatprep.subr.bf16.mxu0 %v2787_v53  ;;  %2480 = vmatprep.subr.bf16.mxu1 %v2787_v53  ;;  %v2750_v37 = vld [vmem:[%s2973_s8 + $0x108] sm:$0xff]   ;;  %v2752_v39 = vld [vmem:[%s2973_s8 + $0x110] sm:$0xff]   ;;  %v2754_v41 = vld [vmem:[%s2973_s8 + $0x118] sm:$0xff]  }
  0x44   : > { %v2755_v42 = vld [vmem:[%s2973_s8 + $0x180] sm:$0xff]   ;;  %v2757_v44 = vld [vmem:[%s2973_s8 + $0x188] sm:$0xff]   ;;  %v2759_v46 = vld [vmem:[%s2973_s8 + $0x190] sm:$0xff]  }
  0x45   : > { %v2756_v43 = vld [vmem:[%s2973_s8 + $0x120] sm:$0xff]   ;;  %v2758_v45 = vld [vmem:[%s2973_s8 + $0x128] sm:$0xff]   ;;  %v2760_v47 = vld [vmem:[%s2973_s8 + $0x130] sm:$0xff]  }
  0x46   : > { %2413 = vmatpush3.bf16.msra.mxu0 %v2707_v58  ;;  %2481 = vmatpush3.bf16.msra.mxu1 %v2707_v58  ;;  %v2761_v48 = vld [vmem:[%s2973_s8 + $0x198] sm:$0xff]  }
  0x47   : > { %2414 = vmatprep.subr.bf16.mxu0 %v2787_v53  ;;  %2482 = vmatprep.subr.bf16.mxu1 %v2787_v53 }
  0x4a   : > { %2415 = vmatpush3.bf16.msra.mxu0 %v2708_v59  ;;  %2483 = vmatpush3.bf16.msra.mxu1 %v2708_v59 }
  0x4b   : > { %2416 = vmatprep.subr.bf16.mxu0 %v2787_v53  ;;  %2484 = vmatprep.subr.bf16.mxu1 %v2787_v53 }
  0x4e   : > { %2417 = vmatpush3.bf16.msra.mxu0 %v2709_v60  ;;  %2485 = vmatpush3.bf16.msra.mxu1 %v2709_v60 }
  0x4f   : > { %2538 = vmatprep.subr.bf16.mxu0 %v2787_v53  ;;  %2606 = vmatprep.subr.bf16.mxu1 %v2787_v53 }
  0x51   : > { %2419 = vmatmul.mubr.bf16.vlgmr.msra.gmra.mrb[0].mxu0 %v2710_v61  ;;  %2487 = vmatmul.mubr.bf16.vlgmr.msra.gmra.mrb[0].mxu1 %v2711_v62 }
  0x52   : > { %2539 = vmatpush3.bf16.msra.mxu0 %v2702_v52  ;;  %2607 = vmatpush3.bf16.msra.mxu1 %v2702_v52 }
  0x53   : > { %2422 = vmatprep.mubr.msk.bf16.mxu0 %vm2788_vm0, %v2787_v53  ;;  %2490 = vmatprep.mubr.msk.bf16.mxu1 %vm2788_vm0, %v2787_v53 }
  0x54   : > { %2540 = vmatprep.subr.bf16.mxu0 %v2787_v53  ;;  %2608 = vmatprep.subr.bf16.mxu1 %v2787_v53 }
  0x56   : > { %2541 = vmatpush3.bf16.msra.mxu0 %v2703_v54  ;;  %2609 = vmatpush3.bf16.msra.mxu1 %v2703_v54 }
  0x57   : > { %2542 = vmatprep.subr.bf16.mxu0 %v2787_v53  ;;  %2610 = vmatprep.subr.bf16.mxu1 %v2787_v53 }
  0x59   : > { %2423 = vmatmul.mubr.bf16.gmra.mrb[4].mxu0 %v2712_v63  ;;  %2491 = vmatmul.mubr.bf16.gmra.mrb[4].mxu1 %v2713_v0 }
  0x5a   : > { %2426 = vmatprep.mubr.msk.bf16.mxu0 %vm2788_vm0, %v2787_v53  ;;  %2494 = vmatprep.mubr.msk.bf16.mxu1 %vm2788_vm0, %v2787_v53 }
  0x5b   : > { %2543 = vmatpush3.bf16.msra.mxu0 %v2704_v55  ;;  %2611 = vmatpush3.bf16.msra.mxu1 %v2704_v55 }
  0x5c   : > { %2544 = vmatprep.subr.bf16.mxu0 %v2787_v53  ;;  %2612 = vmatprep.subr.bf16.mxu1 %v2787_v53 }
  0x5f   : > { %2545 = vmatpush3.bf16.msra.mxu0 %v2705_v56  ;;  %2613 = vmatpush3.bf16.msra.mxu1 %v2705_v56 }
  0x60   : > { %2546 = vmatprep.subr.bf16.mxu0 %v2787_v53  ;;  %2614 = vmatprep.subr.bf16.mxu1 %v2787_v53 }
  0x61   : > { %2427 = vmatmul.mubr.bf16.gmra.mrb[8].mxu0 %v2714_v1  ;;  %2495 = vmatmul.mubr.bf16.gmra.mrb[8].mxu1 %v2715_v2 }
  0x62   : > { %2430 = vmatprep.mubr.msk.bf16.mxu0 %vm2788_vm0, %v2787_v53  ;;  %2498 = vmatprep.mubr.msk.bf16.mxu1 %vm2788_vm0, %v2787_v53 }
  0x63   : > { %2547 = vmatpush3.bf16.msra.mxu0 %v2706_v57  ;;  %2615 = vmatpush3.bf16.msra.mxu1 %v2706_v57 }
  0x64   : > { %2548 = vmatprep.subr.bf16.mxu0 %v2787_v53  ;;  %2616 = vmatprep.subr.bf16.mxu1 %v2787_v53 }
  0x67   : > { %2549 = vmatpush3.bf16.msra.mxu0 %v2707_v58  ;;  %2617 = vmatpush3.bf16.msra.mxu1 %v2707_v58 }
  0x68   : > { %2550 = vmatprep.subr.bf16.mxu0 %v2787_v53  ;;  %2618 = vmatprep.subr.bf16.mxu1 %v2787_v53 }
  0x69   : > { %2431 = vmatmul.mubr.bf16.gmra.mrb[12].mxu0 %v2716_v3  ;;  %2499 = vmatmul.mubr.bf16.gmra.mrb[12].mxu1 %v2717_v4 }
  0x6a   : > { %2434 = vmatprep.mubr.msk.bf16.mxu0 %vm2788_vm0, %v2787_v53  ;;  %2502 = vmatprep.mubr.msk.bf16.mxu1 %vm2788_vm0, %v2787_v53 }
  0x6b   : > { %2551 = vmatpush3.bf16.msra.mxu0 %v2708_v59  ;;  %2619 = vmatpush3.bf16.msra.mxu1 %v2708_v59 }
  0x6c   : > { %2552 = vmatprep.subr.bf16.mxu0 %v2787_v53  ;;  %2620 = vmatprep.subr.bf16.mxu1 %v2787_v53 }
  0x6f   : > { %2553 = vmatpush3.bf16.msra.mxu0 %v2709_v60  ;;  %2621 = vmatpush3.bf16.msra.mxu1 %v2709_v60 }
  0x71   : > { %2435 = vmatmul.mubr.bf16.gmra.mrb[16].mxu0 %v2718_v5  ;;  %2503 = vmatmul.mubr.bf16.gmra.mrb[16].mxu1 %v2719_v6 }
  0x72   : > { %2438 = vmatprep.mubr.msk.bf16.mxu0 %vm2788_vm0, %v2787_v53  ;;  %2506 = vmatprep.mubr.msk.bf16.mxu1 %vm2788_vm0, %v2787_v53 }
  0x79   : > { %2439 = vmatmul.mubr.bf16.gmra.mrb[20].mxu0 %v2720_v7  ;;  %2507 = vmatmul.mubr.bf16.gmra.mrb[20].mxu1 %v2721_v8 }
  0x7a   : > { %2442 = vmatprep.mubr.msk.bf16.mxu0 %vm2788_vm0, %v2787_v53  ;;  %2510 = vmatprep.mubr.msk.bf16.mxu1 %vm2788_vm0, %v2787_v53 }
  0x81   : > { %2443 = vmatmul.mubr.bf16.gmra.mrb[24].mxu0 %v2722_v9  ;;  %2511 = vmatmul.mubr.bf16.gmra.mrb[24].mxu1 %v2723_v10 }
  0x82   : > { %2446 = vmatprep.mubr.msk.bf16.mxu0 %vm2788_vm0, %v2787_v53  ;;  %2514 = vmatprep.mubr.msk.bf16.mxu1 %vm2788_vm0, %v2787_v53 }
  0x89   : > { %2447 = vmatmul.mubr.bf16.gmra.mrb[28].mxu0 %v2724_v11  ;;  %2515 = vmatmul.mubr.bf16.gmra.mrb[28].mxu1 %v2725_v12 }
  0x8a   : > { %2450 = vmatprep.mubr.msk.bf16.mxu0 %vm2788_vm0, %v2787_v53  ;;  %2518 = vmatprep.mubr.msk.bf16.mxu1 %vm2788_vm0, %v2787_v53 }
  0x91   : > { %2451 = vmatmul.mubr.bf16.gmra.mrb[32].mxu0 %v2726_v13  ;;  %2519 = vmatmul.mubr.bf16.gmra.mrb[32].mxu1 %v2727_v14 }
  0x92   : > { %2454 = vmatprep.mubr.msk.bf16.mxu0 %vm2788_vm0, %v2787_v53  ;;  %2522 = vmatprep.mubr.msk.bf16.mxu1 %vm2788_vm0, %v2787_v53 }
  0x99   : > { %2455 = vmatmul.mubr.bf16.gmra.mrb[36].mxu0 %v2728_v15  ;;  %2523 = vmatmul.mubr.bf16.gmra.mrb[36].mxu1 %v2729_v16 }
  0x9a   : > { %2458 = vmatprep.mubr.msk.bf16.mxu0 %vm2788_vm0, %v2787_v53  ;;  %2526 = vmatprep.mubr.msk.bf16.mxu1 %vm2788_vm0, %v2787_v53 }
  0xa1   : > { %2459 = vmatmul.mubr.bf16.gmra.mrb[40].mxu0 %v2730_v17  ;;  %2527 = vmatmul.mubr.bf16.gmra.mrb[40].mxu1 %v2731_v18 }
  0xa2   : > { %2462 = vmatprep.mubr.msk.bf16.mxu0 %vm2788_vm0, %v2787_v53  ;;  %2530 = vmatprep.mubr.msk.bf16.mxu1 %vm2788_vm0, %v2787_v53 }
  0xa9   : > { %2463 = vmatmul.mubr.bf16.gmra.mrb[44].mxu0 %v2732_v19  ;;  %2531 = vmatmul.mubr.bf16.gmra.mrb[44].mxu1 %v2733_v20 }
  0xaa   : > { %2466 = vmatprep.mubr.msk.bf16.mxu0 %vm2788_vm0, %v2787_v53  ;;  %2534 = vmatprep.mubr.msk.bf16.mxu1 %vm2788_vm0, %v2787_v53 }
  0xb1   : > { %2467 = vmatmul.mubr.bf16.gmra.mrb[48].mxu0 %v2734_v21  ;;  %2535 = vmatmul.mubr.bf16.gmra.mrb[48].mxu1 %v2735_v22 }
  0xb2   : > { %2554 = vmatprep.mubr.msk.bf16.mxu0 %vm2788_vm0, %v2787_v53  ;;  %2622 = vmatprep.mubr.msk.bf16.mxu1 %vm2788_vm0, %v2787_v53 }
  0xb9   : > { %2555 = vmatmul.mubr.bf16.vlgmr.msra.gmra.mrb[52].mxu0 %v2736_v23  ;;  %2623 = vmatmul.mubr.bf16.vlgmr.msra.gmra.mrb[52].mxu1 %v2737_v24 }
  0xba   : > { %2558 = vmatprep.mubr.msk.bf16.mxu0 %vm2788_vm0, %v2787_v53  ;;  %2626 = vmatprep.mubr.msk.bf16.mxu1 %vm2788_vm0, %v2787_v53 }
  0xc1   : > { %2559 = vmatmul.mubr.bf16.gmra.mrb[56].mxu0 %v2738_v25  ;;  %2627 = vmatmul.mubr.bf16.gmra.mrb[56].mxu1 %v2739_v26 }
  0xc2   : > { %2562 = vmatprep.mubr.msk.bf16.mxu0 %vm2788_vm0, %v2787_v53  ;;  %2630 = vmatprep.mubr.msk.bf16.mxu1 %vm2788_vm0, %v2787_v53 }
  0xc9   : > { %2563 = vmatmul.mubr.bf16.gmra.mrb[60].mxu0 %v2740_v27  ;;  %2631 = vmatmul.mubr.bf16.gmra.mrb[60].mxu1 %v2741_v28 }
  0xca   : > { %2566 = vmatprep.mubr.msk.bf16.mxu0 %vm2788_vm0, %v2787_v53  ;;  %2634 = vmatprep.mubr.msk.bf16.mxu1 %vm2788_vm0, %v2787_v53 }
  0xd1   : > { %2567 = vmatmul.mubr.bf16.gmra.mrb[64].mxu0 %v2742_v29  ;;  %2635 = vmatmul.mubr.bf16.gmra.mrb[64].mxu1 %v2743_v30 }
  0xd2   : > { %2570 = vmatprep.mubr.msk.bf16.mxu0 %vm2788_vm0, %v2787_v53  ;;  %2638 = vmatprep.mubr.msk.bf16.mxu1 %vm2788_vm0, %v2787_v53 }
  0xd9   : > { %2571 = vmatmul.mubr.bf16.gmra.mrb[68].mxu0 %v2744_v31  ;;  %2639 = vmatmul.mubr.bf16.gmra.mrb[68].mxu1 %v2745_v32 }
  0xda   : > { %2574 = vmatprep.mubr.msk.bf16.mxu0 %vm2788_vm0, %v2787_v53  ;;  %2642 = vmatprep.mubr.msk.bf16.mxu1 %vm2788_vm0, %v2787_v53 }
  0xe1   : > { %2575 = vmatmul.mubr.bf16.gmra.mrb[72].mxu0 %v2746_v33  ;;  %2643 = vmatmul.mubr.bf16.gmra.mrb[72].mxu1 %v2747_v34 }
  0xe2   : > { %2578 = vmatprep.mubr.msk.bf16.mxu0 %vm2788_vm0, %v2787_v53  ;;  %2646 = vmatprep.mubr.msk.bf16.mxu1 %vm2788_vm0, %v2787_v53 }
  0xe9   : > { %2579 = vmatmul.mubr.bf16.gmra.mrb[76].mxu0 %v2748_v35  ;;  %2647 = vmatmul.mubr.bf16.gmra.mrb[76].mxu1 %v2749_v36 }
  0xea   : > { %2582 = vmatprep.mubr.msk.bf16.mxu0 %vm2788_vm0, %v2787_v53  ;;  %2650 = vmatprep.mubr.msk.bf16.mxu1 %vm2788_vm0, %v2787_v53 }
  0xf1   : > { %2583 = vmatmul.mubr.bf16.gmra.mrb[80].mxu0 %v2750_v37  ;;  %2651 = vmatmul.mubr.bf16.gmra.mrb[80].mxu1 %v2751_v38 }
  0xf2   : > { %2586 = vmatprep.mubr.msk.bf16.mxu0 %vm2788_vm0, %v2787_v53  ;;  %2654 = vmatprep.mubr.msk.bf16.mxu1 %vm2788_vm0, %v2787_v53 }
  0xf9   : > { %2587 = vmatmul.mubr.bf16.gmra.mrb[84].mxu0 %v2752_v39  ;;  %2655 = vmatmul.mubr.bf16.gmra.mrb[84].mxu1 %v2753_v40 }
  0xfa   : > { %2590 = vmatprep.mubr.msk.bf16.mxu0 %vm2788_vm0, %v2787_v53  ;;  %2658 = vmatprep.mubr.msk.bf16.mxu1 %vm2788_vm0, %v2787_v53 }
 0x101   : > { %2591 = vmatmul.mubr.bf16.gmra.mrb[88].mxu0 %v2754_v41  ;;  %2659 = vmatmul.mubr.bf16.gmra.mrb[88].mxu1 %v2755_v42 }
 0x102   : > { %2594 = vmatprep.mubr.msk.bf16.mxu0 %vm2788_vm0, %v2787_v53  ;;  %2662 = vmatprep.mubr.msk.bf16.mxu1 %vm2788_vm0, %v2787_v53 }
 0x109   : > { %2595 = vmatmul.mubr.bf16.gmra.mrb[92].mxu0 %v2756_v43  ;;  %2663 = vmatmul.mubr.bf16.gmra.mrb[92].mxu1 %v2757_v44 }
 0x10a   : > { %2598 = vmatprep.mubr.msk.bf16.mxu0 %vm2788_vm0, %v2787_v53  ;;  %2666 = vmatprep.mubr.msk.bf16.mxu1 %vm2788_vm0, %v2787_v53 }
 0x111   : > { %2599 = vmatmul.mubr.bf16.gmra.mrb[96].mxu0 %v2758_v45  ;;  %2667 = vmatmul.mubr.bf16.gmra.mrb[96].mxu1 %v2759_v46 }
 0x112   : > { %2602 = vmatprep.mubr.msk.bf16.mxu0 %vm2788_vm0, %v2787_v53  ;;  %2670 = vmatprep.mubr.msk.bf16.mxu1 %vm2788_vm0, %v2787_v53 }
 0x119   : > { %2603 = vmatmul.mubr.bf16.gmra.mrb[100].mxu0 %v2760_v47  ;;  %2671 = vmatmul.mubr.bf16.gmra.mrb[100].mxu1 %v2761_v48 }
 0x124   : > { %v837_v50 = vpop.f32.mrb[0].mxu0  ;;  %v1105_v51 = vpop.f32.mrb[0].mxu1 }
 0x125   : > { %v838_v52 = vadd.f32 %v3171_v49, %v837_v50  ;;  %v1106_v54 = vadd.f32 %v3171_v49, %v1105_v51  ;;  %v2420_v55 = vpop.f32.mrb[1].mxu0  ;;  %v2488_v56 = vpop.f32.mrb[1].mxu1 }
 0x126   : > { %v840_v57 = vpop.f32.mrb[2].mxu0  ;;  %v1108_v58 = vpop.f32.mrb[2].mxu1 }
 0x127   : > { %v940_v53 = vmax.f32 %v838_v52, 0.0  ;;  %v1208_v59 = vmax.f32 %v1106_v54, 0.0  ;;  %v841_v60 = vadd.f32 %v3171_v49, %v840_v57  ;;  %v1109_v61 = vadd.f32 %v3171_v49, %v1108_v58  ;;  %v2421_v62 = vpop.f32.mrb[3].mxu0  ;;  %v2489_v63 = vpop.f32.mrb[3].mxu1 }
 0x129   : > { %v3177_v0 = vmax.f32 %v940_v53, %v1208_v59  ;;  %v941_v1 = vmax.f32 %v841_v60, 0.0  ;;  %v1209_v2 = vmax.f32 %v1109_v61, 0.0 }
 0x12b   : > { %v3179_v3 = vmax.f32 %v941_v1, %v1209_v2 }
 0x12c   : > { %v845_v4 = vpop.f32.mrb[4].mxu0  ;;  %v1113_v5 = vpop.f32.mrb[4].mxu1 }
 0x12d   : > { %v846_v6 = vadd.f32 %v3171_v49, %v845_v4  ;;  %v1114_v7 = vadd.f32 %v3171_v49, %v1113_v5  ;;  %v2424_v8 = vpop.f32.mrb[5].mxu0  ;;  %v2492_v9 = vpop.f32.mrb[5].mxu1 }
 0x12e   : > { %v848_v10 = vpop.f32.mrb[6].mxu0  ;;  %v1116_v11 = vpop.f32.mrb[6].mxu1 }
 0x12f   : > { %v942_v12 = vmax.f32 %v846_v6, 0.0  ;;  %v1210_v13 = vmax.f32 %v1114_v7, 0.0  ;;  %v849_v14 = vadd.f32 %v3171_v49, %v848_v10  ;;  %v1117_v15 = vadd.f32 %v3171_v49, %v1116_v11  ;;  %v2425_v16 = vpop.f32.mrb[7].mxu0  ;;  %v2493_v17 = vpop.f32.mrb[7].mxu1 }
 0x131   : > { %v3185_v18 = vmax.f32 %v942_v12, %v1210_v13  ;;  %v943_v19 = vmax.f32 %v849_v14, 0.0  ;;  %v1211_v20 = vmax.f32 %v1117_v15, 0.0 }
 0x133   : > { %v3187_v21 = vmax.f32 %v943_v19, %v1211_v20 }
 0x134   : > { %v853_v22 = vpop.f32.mrb[8].mxu0  ;;  %v1121_v23 = vpop.f32.mrb[8].mxu1 }
 0x135   : > { %v854_v24 = vadd.f32 %v3171_v49, %v853_v22  ;;  %v1122_v25 = vadd.f32 %v3171_v49, %v1121_v23  ;;  %v2428_v26 = vpop.f32.mrb[9].mxu0  ;;  %v2496_v27 = vpop.f32.mrb[9].mxu1 }
 0x136   : > { %v856_v28 = vpop.f32.mrb[10].mxu0  ;;  %v1124_v29 = vpop.f32.mrb[10].mxu1 }
 0x137   : > { %v944_v30 = vmax.f32 %v854_v24, 0.0  ;;  %v1212_v31 = vmax.f32 %v1122_v25, 0.0  ;;  %v857_v32 = vadd.f32 %v3171_v49, %v856_v28  ;;  %v1125_v33 = vadd.f32 %v3171_v49, %v1124_v29  ;;  %v2429_v34 = vpop.f32.mrb[11].mxu0  ;;  %v2497_v35 = vpop.f32.mrb[11].mxu1 }
 0x139   : > { %v3193_v36 = vmax.f32 %v944_v30, %v1212_v31  ;;  %v945_v37 = vmax.f32 %v857_v32, 0.0  ;;  %v1213_v38 = vmax.f32 %v1125_v33, 0.0 }
 0x13b   : > { %v3195_v39 = vmax.f32 %v945_v37, %v1213_v38 }
 0x13c   : > { %v861_v40 = vpop.f32.mrb[12].mxu0  ;;  %v1129_v41 = vpop.f32.mrb[12].mxu1 }
 0x13d   : > { %v862_v42 = vadd.f32 %v3171_v49, %v861_v40  ;;  %v1130_v43 = vadd.f32 %v3171_v49, %v1129_v41  ;;  %v2432_v44 = vpop.f32.mrb[13].mxu0  ;;  %v2500_v45 = vpop.f32.mrb[13].mxu1 }
 0x13e   : > { %v864_v46 = vpop.f32.mrb[14].mxu0  ;;  %v1132_v47 = vpop.f32.mrb[14].mxu1 }
 0x13f   : > { %v946_v48 = vmax.f32 %v862_v42, 0.0  ;;  %v1214_v50 = vmax.f32 %v1130_v43, 0.0  ;;  %v865_v51 = vadd.f32 %v3171_v49, %v864_v46  ;;  %v1133_v52 = vadd.f32 %v3171_v49, %v1132_v47  ;;  %v2433_v54 = vpop.f32.mrb[15].mxu0  ;;  %v2501_v55 = vpop.f32.mrb[15].mxu1 }
 0x141   : > { %v3201_v56 = vmax.f32 %v946_v48, %v1214_v50  ;;  %v947_v57 = vmax.f32 %v865_v51, 0.0  ;;  %v1215_v58 = vmax.f32 %v1133_v52, 0.0 }
 0x143   : > { %v3203_v53 = vmax.f32 %v947_v57, %v1215_v58 }
 0x144   : > { %v869_v59 = vpop.f32.mrb[16].mxu0  ;;  %v1137_v60 = vpop.f32.mrb[16].mxu1 }
 0x145   : > { %v870_v61 = vadd.f32 %v3171_v49, %v869_v59  ;;  %v1138_v62 = vadd.f32 %v3171_v49, %v1137_v60  ;;  %v2436_v63 = vpop.f32.mrb[17].mxu0  ;;  %v2504_v1 = vpop.f32.mrb[17].mxu1 }
 0x146   : > { %v872_v2 = vpop.f32.mrb[18].mxu0  ;;  %v1140_v4 = vpop.f32.mrb[18].mxu1 }
 0x147   : > { %v948_v5 = vmax.f32 %v870_v61, 0.0  ;;  %v1216_v6 = vmax.f32 %v1138_v62, 0.0  ;;  %v873_v7 = vadd.f32 %v3171_v49, %v872_v2  ;;  %v1141_v8 = vadd.f32 %v3171_v49, %v1140_v4  ;;  %v2437_v9 = vpop.f32.mrb[19].mxu0  ;;  %v2505_v10 = vpop.f32.mrb[19].mxu1 }
 0x149   : > { %v3209_v11 = vmax.f32 %v948_v5, %v1216_v6  ;;  %v949_v12 = vmax.f32 %v873_v7, 0.0  ;;  %v1217_v13 = vmax.f32 %v1141_v8, 0.0 }
 0x14b   : > { %v3211_v14 = vmax.f32 %v949_v12, %v1217_v13 }
 0x14c   : > { %v877_v15 = vpop.f32.mrb[20].mxu0  ;;  %v1145_v16 = vpop.f32.mrb[20].mxu1 }
 0x14d   : > { %v878_v17 = vadd.f32 %v3171_v49, %v877_v15  ;;  %v1146_v19 = vadd.f32 %v3171_v49, %v1145_v16  ;;  %v2440_v20 = vpop.f32.mrb[21].mxu0  ;;  %v2508_v22 = vpop.f32.mrb[21].mxu1 }
 0x14e   : > { %v880_v23 = vpop.f32.mrb[22].mxu0  ;;  %v1148_v24 = vpop.f32.mrb[22].mxu1 }
 0x14f   : > { %v950_v25 = vmax.f32 %v878_v17, 0.0  ;;  %v1218_v26 = vmax.f32 %v1146_v19, 0.0  ;;  %v881_v27 = vadd.f32 %v3171_v49, %v880_v23  ;;  %v1149_v28 = vadd.f32 %v3171_v49, %v1148_v24  ;;  %v2441_v29 = vpop.f32.mrb[23].mxu0  ;;  %v2509_v30 = vpop.f32.mrb[23].mxu1 }
 0x151   : > { %v3217_v31 = vmax.f32 %v950_v25, %v1218_v26  ;;  %v951_v32 = vmax.f32 %v881_v27, 0.0  ;;  %v1219_v33 = vmax.f32 %v1149_v28, 0.0 }
 0x153   : > { %v3219_v34 = vmax.f32 %v951_v32, %v1219_v33 }
 0x154   : > { %v885_v35 = vpop.f32.mrb[24].mxu0  ;;  %v1153_v37 = vpop.f32.mrb[24].mxu1 }
 0x155   : > { %v886_v38 = vadd.f32 %v3171_v49, %v885_v35  ;;  %v1154_v40 = vadd.f32 %v3171_v49, %v1153_v37  ;;  %v2444_v41 = vpop.f32.mrb[25].mxu0  ;;  %v2512_v42 = vpop.f32.mrb[25].mxu1 }
 0x156   : > { %v888_v43 = vpop.f32.mrb[26].mxu0  ;;  %v1156_v44 = vpop.f32.mrb[26].mxu1 }
 0x157   : > { %v952_v45 = vmax.f32 %v886_v38, 0.0  ;;  %v1220_v46 = vmax.f32 %v1154_v40, 0.0  ;;  %v889_v47 = vadd.f32 %v3171_v49, %v888_v43  ;;  %v1157_v48 = vadd.f32 %v3171_v49, %v1156_v44  ;;  %v2445_v50 = vpop.f32.mrb[27].mxu0  ;;  %v2513_v51 = vpop.f32.mrb[27].mxu1 }
 0x159   : > { %v3225_v52 = vmax.f32 %v952_v45, %v1220_v46  ;;  %v953_v54 = vmax.f32 %v889_v47, 0.0  ;;  %v1221_v55 = vmax.f32 %v1157_v48, 0.0 }
 0x15b   : > { %v3227_v57 = vmax.f32 %v953_v54, %v1221_v55 }
 0x15c   : > { %v893_v58 = vpop.f32.mrb[28].mxu0  ;;  %v1161_v59 = vpop.f32.mrb[28].mxu1 }
 0x15d   : > { %v894_v60 = vadd.f32 %v3171_v49, %v893_v58  ;;  %v1162_v61 = vadd.f32 %v3171_v49, %v1161_v59  ;;  %v2448_v62 = vpop.f32.mrb[29].mxu0  ;;  %v2516_v63 = vpop.f32.mrb[29].mxu1 }
 0x15e   : > { %v896_v1 = vpop.f32.mrb[30].mxu0  ;;  %v1164_v2 = vpop.f32.mrb[30].mxu1 }
 0x15f   : > { %v954_v4 = vmax.f32 %v894_v60, 0.0  ;;  %v1222_v5 = vmax.f32 %v1162_v61, 0.0  ;;  %v897_v6 = vadd.f32 %v3171_v49, %v896_v1  ;;  %v1165_v7 = vadd.f32 %v3171_v49, %v1164_v2  ;;  %v2449_v8 = vpop.f32.mrb[31].mxu0  ;;  %v2517_v9 = vpop.f32.mrb[31].mxu1 }
 0x161   : > { %v3233_v10 = vmax.f32 %v954_v4, %v1222_v5  ;;  %v955_v12 = vmax.f32 %v897_v6, 0.0  ;;  %v1223_v13 = vmax.f32 %v1165_v7, 0.0 }
 0x163   : > { %v3235_v15 = vmax.f32 %v955_v12, %v1223_v13 }
 0x164   : > { %v901_v16 = vpop.f32.mrb[32].mxu0  ;;  %v1169_v17 = vpop.f32.mrb[32].mxu1 }
 0x165   : > { %v902_v19 = vadd.f32 %v3171_v49, %v901_v16  ;;  %v1170_v20 = vadd.f32 %v3171_v49, %v1169_v17  ;;  %v2452_v22 = vpop.f32.mrb[33].mxu0  ;;  %v2520_v23 = vpop.f32.mrb[33].mxu1 }
 0x166   : > { %v904_v24 = vpop.f32.mrb[34].mxu0  ;;  %v1172_v25 = vpop.f32.mrb[34].mxu1 }
 0x167   : > { %v956_v26 = vmax.f32 %v902_v19, 0.0  ;;  %v1224_v27 = vmax.f32 %v1170_v20, 0.0  ;;  %v905_v28 = vadd.f32 %v3171_v49, %v904_v24  ;;  %v1173_v29 = vadd.f32 %v3171_v49, %v1172_v25  ;;  %v2453_v30 = vpop.f32.mrb[35].mxu0  ;;  %v2521_v32 = vpop.f32.mrb[35].mxu1 }
 0x169   : > { %v3241_v33 = vmax.f32 %v956_v26, %v1224_v27  ;;  %v957_v35 = vmax.f32 %v905_v28, 0.0  ;;  %v1225_v37 = vmax.f32 %v1173_v29, 0.0 }
 0x16b   : > { %v3243_v38 = vmax.f32 %v957_v35, %v1225_v37 }
 0x16c   : > { %v909_v40 = vpop.f32.mrb[36].mxu0  ;;  %v1177_v41 = vpop.f32.mrb[36].mxu1 }
 0x16d   : > { %v910_v42 = vadd.f32 %v3171_v49, %v909_v40  ;;  %v1178_v43 = vadd.f32 %v3171_v49, %v1177_v41  ;;  %v2456_v44 = vpop.f32.mrb[37].mxu0  ;;  %v2524_v45 = vpop.f32.mrb[37].mxu1 }
 0x16e   : > { %v912_v46 = vpop.f32.mrb[38].mxu0  ;;  %v1180_v47 = vpop.f32.mrb[38].mxu1 }
 0x16f   : > { %v958_v48 = vmax.f32 %v910_v42, 0.0  ;;  %v1226_v50 = vmax.f32 %v1178_v43, 0.0  ;;  %v913_v51 = vadd.f32 %v3171_v49, %v912_v46  ;;  %v1181_v54 = vadd.f32 %v3171_v49, %v1180_v47  ;;  %v2457_v55 = vpop.f32.mrb[39].mxu0  ;;  %v2525_v58 = vpop.f32.mrb[39].mxu1 }
 0x171   : > { %v3249_v59 = vmax.f32 %v958_v48, %v1226_v50  ;;  %v959_v60 = vmax.f32 %v913_v51, 0.0  ;;  %v1227_v61 = vmax.f32 %v1181_v54, 0.0 }
 0x173   : > { %v3251_v62 = vmax.f32 %v959_v60, %v1227_v61 }
 0x174   : > { %v917_v63 = vpop.f32.mrb[40].mxu0  ;;  %v1185_v1 = vpop.f32.mrb[40].mxu1 }
 0x175   : > { %v918_v2 = vadd.f32 %v3171_v49, %v917_v63  ;;  %v1186_v4 = vadd.f32 %v3171_v49, %v1185_v1  ;;  %v2460_v5 = vpop.f32.mrb[41].mxu0  ;;  %v2528_v6 = vpop.f32.mrb[41].mxu1 }
 0x176   : > { %v920_v7 = vpop.f32.mrb[42].mxu0  ;;  %v1188_v8 = vpop.f32.mrb[42].mxu1 }
 0x177   : > { %v960_v9 = vmax.f32 %v918_v2, 0.0  ;;  %v1228_v12 = vmax.f32 %v1186_v4, 0.0  ;;  %v921_v13 = vadd.f32 %v3171_v49, %v920_v7  ;;  %v1189_v16 = vadd.f32 %v3171_v49, %v1188_v8  ;;  %v2461_v17 = vpop.f32.mrb[43].mxu0  ;;  %v2529_v19 = vpop.f32.mrb[43].mxu1 }
 0x179   : > { %v3257_v20 = vmax.f32 %v960_v9, %v1228_v12  ;;  %v961_v22 = vmax.f32 %v921_v13, 0.0  ;;  %v1229_v23 = vmax.f32 %v1189_v16, 0.0 }
 0x17b   : > { %v3259_v24 = vmax.f32 %v961_v22, %v1229_v23 }
 0x17c   : > { %v925_v25 = vpop.f32.mrb[44].mxu0  ;;  %v1193_v26 = vpop.f32.mrb[44].mxu1 }
 0x17d   : > { %v926_v27 = vadd.f32 %v3171_v49, %v925_v25  ;;  %v1194_v28 = vadd.f32 %v3171_v49, %v1193_v26  ;;  %v2464_v29 = vpop.f32.mrb[45].mxu0  ;;  %v2532_v30 = vpop.f32.mrb[45].mxu1 }
 0x17e   : > { %v928_v32 = vpop.f32.mrb[46].mxu0  ;;  %v1196_v35 = vpop.f32.mrb[46].mxu1 }
 0x17f   : > { %v962_v37 = vmax.f32 %v926_v27, 0.0  ;;  %v1230_v40 = vmax.f32 %v1194_v28, 0.0  ;;  %v929_v41 = vadd.f32 %v3171_v49, %v928_v32  ;;  %v1197_v42 = vadd.f32 %v3171_v49, %v1196_v35  ;;  %v2465_v43 = vpop.f32.mrb[47].mxu0  ;;  %v2533_v44 = vpop.f32.mrb[47].mxu1 }
 0x181   : > { %v3265_v45 = vmax.f32 %v962_v37, %v1230_v40  ;;  %v963_v46 = vmax.f32 %v929_v41, 0.0  ;;  %v1231_v47 = vmax.f32 %v1197_v42, 0.0 }
 0x183   : > { %v3267_v48 = vmax.f32 %v963_v46, %v1231_v47 }
 0x184   : > { %v933_v50 = vpop.f32.mrb[48].mxu0  ;;  %v1201_v51 = vpop.f32.mrb[48].mxu1 }
 0x185   : > { %v934_v54 = vadd.f32 %v3171_v49, %v933_v50  ;;  %v1202_v55 = vadd.f32 %v3171_v49, %v1201_v51  ;;  %v2468_v58 = vpop.f32.mrb[49].mxu0  ;;  %v2536_v60 = vpop.f32.mrb[49].mxu1 }
 0x186   : > { %v936_v61 = vpop.f32.mrb[50].mxu0  ;;  %v1204_v63 = vpop.f32.mrb[50].mxu1 }
 0x187   : > { %v964_v1 = vmax.f32 %v934_v54, 0.0  ;;  %v1232_v2 = vmax.f32 %v1202_v55, 0.0  ;;  %v937_v4 = vadd.f32 %v3171_v49, %v936_v61  ;;  %v1205_v5 = vadd.f32 %v3171_v49, %v1204_v63  ;;  %v2469_v6 = vpop.f32.mrb[51].mxu0  ;;  %v2537_v7 = vpop.f32.mrb[51].mxu1 }
 0x189   : > { %v3275_v8 = vmax.f32 %v964_v1, %v1232_v2  ;;  %v965_v9 = vmax.f32 %v937_v4, 0.0  ;;  %v1233_v12 = vmax.f32 %v1205_v5, 0.0 }
 0x18b   : > { %v3277_v13 = vmax.f32 %v965_v9, %v1233_v12 }
 0x18c   : > { %v1399_v16 = vpop.f32.mrb[52].mxu0  ;;  %v1693_v17 = vpop.f32.mrb[52].mxu1 }
 0x18d   : > { %v1400_v19 = vadd.f32 %v3171_v49, %v1399_v16  ;;  %v1694_v22 = vadd.f32 %v3171_v49, %v1693_v17  ;;  %v2556_v23 = vpop.f32.mrb[53].mxu0  ;;  %v2624_v25 = vpop.f32.mrb[53].mxu1 }
 0x18e   : > { %v1402_v26 = vpop.f32.mrb[54].mxu0  ;;  %v1696_v27 = vpop.f32.mrb[54].mxu1 }
 0x18f   : > { %v1502_v28 = vmax.f32 %v1400_v19, 0.0  ;;  %v1796_v29 = vmax.f32 %v1694_v22, 0.0  ;;  %v1403_v30 = vadd.f32 %v3171_v49, %v1402_v26  ;;  %v1697_v32 = vadd.f32 %v3171_v49, %v1696_v27  ;;  %v2557_v35 = vpop.f32.mrb[55].mxu0  ;;  %v2625_v37 = vpop.f32.mrb[55].mxu1 }
 0x191   : > { %v1528_v40 = vmax.f32 %v3177_v0, %v1502_v28  ;;  %v1503_v41 = vmax.f32 %v1403_v30, 0.0  ;;  %v1797_v44 = vmax.f32 %v1697_v32, 0.0 }
 0x193   : > { %v1822_v42 = vmax.f32 %v1528_v40, %v1796_v29  ;;  %v1529_v43 = vmax.f32 %v3179_v3, %v1503_v41 }
 0x194   : > { %v1407_v46 = vpop.f32.mrb[56].mxu0  ;;  %v1701_v47 = vpop.f32.mrb[56].mxu1 }
 0x195   : > { %v1823_v50 = vmax.f32 %v1529_v43, %v1797_v44  ;;  %v1408_v51 = vadd.f32 %v3171_v49, %v1407_v46  ;;  %v1702_v54 = vadd.f32 %v3171_v49, %v1701_v47  ;;  %v2560_v55 = vpop.f32.mrb[57].mxu0  ;;  %v2628_v58 = vpop.f32.mrb[57].mxu1 }
 0x196   : > { %v1410_v0 = vpop.f32.mrb[58].mxu0  ;;  %v1704_v60 = vpop.f32.mrb[58].mxu1 }
 0x197   : > { %v2244_v3 = vpack.c.bf16 %v1823_v50, %v1822_v42  ;;  %v1504_v61 = vmax.f32 %v1408_v51, 0.0  ;;  %v1798_v63 = vmax.f32 %v1702_v54, 0.0  ;;  %v1411_v1 = vadd.f32 %v3171_v49, %v1410_v0  ;;  %v2561_v2 = vpop.f32.mrb[59].mxu0  ;;  %v2629_v4 = vpop.f32.mrb[59].mxu1 }
 0x198   : > { %v1705_v5 = vadd.f32 %v3171_v49, %v1704_v60 }
 0x199   : > { %2245 = vst [vmem:[%s3290_s28] sm:$0xff] %v2244_v3   ;;  %v1530_v6 = vmax.f32 %v3185_v18, %v1504_v61  ;;  %v1505_v7 = vmax.f32 %v1411_v1, 0.0 }
 0x19a   : > { %v1799_v16 = vmax.f32 %v1705_v5, 0.0 }
 0x19b   : > { %v1824_v9 = vmax.f32 %v1530_v6, %v1798_v63  ;;  %v1531_v12 = vmax.f32 %v3187_v21, %v1505_v7 }
 0x19c   : > { %v1415_v17 = vpop.f32.mrb[60].mxu0  ;;  %v1709_v19 = vpop.f32.mrb[60].mxu1 }
 0x19d   : > { %v1825_v22 = vmax.f32 %v1531_v12, %v1799_v16  ;;  %v1416_v23 = vadd.f32 %v3171_v49, %v1415_v17  ;;  %v1710_v25 = vadd.f32 %v3171_v49, %v1709_v19  ;;  %v2564_v26 = vpop.f32.mrb[61].mxu0  ;;  %v2632_v27 = vpop.f32.mrb[61].mxu1 }
 0x19e   : > { %v1418_v28 = vpop.f32.mrb[62].mxu0  ;;  %v1712_v29 = vpop.f32.mrb[62].mxu1 }
 0x19f   : > { %v2249_v30 = vpack.c.bf16 %v1825_v22, %v1824_v9  ;;  %v1506_v32 = vmax.f32 %v1416_v23, 0.0  ;;  %v1800_v18 = vmax.f32 %v1710_v25, 0.0  ;;  %v1419_v35 = vadd.f32 %v3171_v49, %v1418_v28  ;;  %v2565_v37 = vpop.f32.mrb[63].mxu0  ;;  %v2633_v21 = vpop.f32.mrb[63].mxu1 }
 0x1a0   : > { %v1713_v40 = vadd.f32 %v3171_v49, %v1712_v29 }
 0x1a1   : > { %2306 = vst [vmem:[%s3290_s28 + $0x8] sm:$0xff] %v2249_v30   ;;  %v1532_v41 = vmax.f32 %v3193_v36, %v1506_v32  ;;  %v1507_v42 = vmax.f32 %v1419_v35, 0.0 }
 0x1a2   : > { %v1801_v46 = vmax.f32 %v1713_v40, 0.0 }
 0x1a3   : > { %v1826_v43 = vmax.f32 %v1532_v41, %v1800_v18  ;;  %v1533_v44 = vmax.f32 %v3195_v39, %v1507_v42 }
 0x1a4   : > { %v1423_v47 = vpop.f32.mrb[64].mxu0  ;;  %v1717_v50 = vpop.f32.mrb[64].mxu1 }
 0x1a5   : > { %v1827_v51 = vmax.f32 %v1533_v44, %v1801_v46  ;;  %v1424_v54 = vadd.f32 %v3171_v49, %v1423_v47  ;;  %v1718_v55 = vadd.f32 %v3171_v49, %v1717_v50  ;;  %v2568_v58 = vpop.f32.mrb[65].mxu0  ;;  %v2636_v0 = vpop.f32.mrb[65].mxu1 }
 0x1a6   : > { %v1426_v60 = vpop.f32.mrb[66].mxu0  ;;  %v1720_v3 = vpop.f32.mrb[66].mxu1 }
 0x1a7   : > { %v2254_v61 = vpack.c.bf16 %v1827_v51, %v1826_v43  ;;  %v1508_v63 = vmax.f32 %v1424_v54, 0.0  ;;  %v1802_v36 = vmax.f32 %v1718_v55, 0.0  ;;  %v1427_v1 = vadd.f32 %v3171_v49, %v1426_v60  ;;  %v2569_v2 = vpop.f32.mrb[67].mxu0  ;;  %v2637_v39 = vpop.f32.mrb[67].mxu1 }
 0x1a8   : > { %v1721_v4 = vadd.f32 %v3171_v49, %v1720_v3 }
 0x1a9   : > { %2307 = vst [vmem:[%s3290_s28 + $0x10] sm:$0xff] %v2254_v61   ;;  %v1534_v5 = vmax.f32 %v3201_v56, %v1508_v63  ;;  %v1509_v6 = vmax.f32 %v1427_v1, 0.0 }
 0x1aa   : > { %v1803_v12 = vmax.f32 %v1721_v4, 0.0 }
 0x1ab   : > { %v1828_v7 = vmax.f32 %v1534_v5, %v1802_v36  ;;  %v1535_v9 = vmax.f32 %v3203_v53, %v1509_v6 }
 0x1ac   : > { %v1431_v16 = vpop.f32.mrb[68].mxu0  ;;  %v1725_v17 = vpop.f32.mrb[68].mxu1 }
 0x1ad   : > { %v1829_v19 = vmax.f32 %v1535_v9, %v1803_v12  ;;  %v1432_v22 = vadd.f32 %v3171_v49, %v1431_v16  ;;  %v1726_v23 = vadd.f32 %v3171_v49, %v1725_v17  ;;  %v2572_v25 = vpop.f32.mrb[69].mxu0  ;;  %v2640_v26 = vpop.f32.mrb[69].mxu1 }
 0x1ae   : > { %v1434_v27 = vpop.f32.mrb[70].mxu0  ;;  %v1728_v28 = vpop.f32.mrb[70].mxu1 }
 0x1af   : > { %v2259_v29 = vpack.c.bf16 %v1829_v19, %v1828_v7  ;;  %v1510_v30 = vmax.f32 %v1432_v22, 0.0  ;;  %v1804_v56 = vmax.f32 %v1726_v23, 0.0  ;;  %v1435_v32 = vadd.f32 %v3171_v49, %v1434_v27  ;;  %v2573_v18 = vpop.f32.mrb[71].mxu0  ;;  %v2641_v53 = vpop.f32.mrb[71].mxu1 }
 0x1b0   : > { %v1729_v35 = vadd.f32 %v3171_v49, %v1728_v28 }
 0x1b1   : > { %2308 = vst [vmem:[%s3290_s28 + $0x18] sm:$0xff] %v2259_v29   ;;  %v1536_v37 = vmax.f32 %v3209_v11, %v1510_v30  ;;  %v1511_v21 = vmax.f32 %v1435_v32, 0.0 }
 0x1b2   : > { %v1805_v42 = vmax.f32 %v1729_v35, 0.0 }
 0x1b3   : > { %v1830_v40 = vmax.f32 %v1536_v37, %v1804_v56  ;;  %v1537_v41 = vmax.f32 %v3211_v14, %v1511_v21 }
 0x1b4   : > { %v1439_v43 = vpop.f32.mrb[72].mxu0  ;;  %v1733_v44 = vpop.f32.mrb[72].mxu1 }
 0x1b5   : > { %v1831_v46 = vmax.f32 %v1537_v41, %v1805_v42  ;;  %v1440_v47 = vadd.f32 %v3171_v49, %v1439_v43  ;;  %v1734_v50 = vadd.f32 %v3171_v49, %v1733_v44  ;;  %v2576_v51 = vpop.f32.mrb[73].mxu0  ;;  %v2644_v54 = vpop.f32.mrb[73].mxu1 }
 0x1b6   : > { %v1442_v55 = vpop.f32.mrb[74].mxu0  ;;  %v1736_v58 = vpop.f32.mrb[74].mxu1 }
 0x1b7   : > { %v2264_v0 = vpack.c.bf16 %v1831_v46, %v1830_v40  ;;  %v1512_v60 = vmax.f32 %v1440_v47, 0.0  ;;  %v1806_v11 = vmax.f32 %v1734_v50, 0.0  ;;  %v1443_v3 = vadd.f32 %v3171_v49, %v1442_v55  ;;  %v2577_v61 = vpop.f32.mrb[75].mxu0  ;;  %v2645_v14 = vpop.f32.mrb[75].mxu1 }
 0x1b8   : > { %v1737_v63 = vadd.f32 %v3171_v49, %v1736_v58 }
 0x1b9   : > { %2309 = vst [vmem:[%s3290_s28 + $0x20] sm:$0xff] %v2264_v0   ;;  %v1538_v36 = vmax.f32 %v3217_v31, %v1512_v60  ;;  %v1513_v1 = vmax.f32 %v1443_v3, 0.0 }
 0x1ba   : > { %v1807_v4 = vmax.f32 %v1737_v63, 0.0 }
 0x1bb   : > { %v1832_v2 = vmax.f32 %v1538_v36, %v1806_v11  ;;  %v1539_v39 = vmax.f32 %v3219_v34, %v1513_v1 }
 0x1bc   : > { %v1447_v5 = vpop.f32.mrb[76].mxu0  ;;  %v1741_v6 = vpop.f32.mrb[76].mxu1 }
 0x1bd   : > { %v1833_v7 = vmax.f32 %v1539_v39, %v1807_v4  ;;  %v1448_v9 = vadd.f32 %v3171_v49, %v1447_v5  ;;  %v1742_v12 = vadd.f32 %v3171_v49, %v1741_v6  ;;  %v2580_v16 = vpop.f32.mrb[77].mxu0  ;;  %v2648_v17 = vpop.f32.mrb[77].mxu1 }
 0x1be   : > { %v1450_v19 = vpop.f32.mrb[78].mxu0  ;;  %v1744_v22 = vpop.f32.mrb[78].mxu1 }
 0x1bf   : > { %v2269_v23 = vpack.c.bf16 %v1833_v7, %v1832_v2  ;;  %v1514_v25 = vmax.f32 %v1448_v9, 0.0  ;;  %v1808_v31 = vmax.f32 %v1742_v12, 0.0  ;;  %v1451_v26 = vadd.f32 %v3171_v49, %v1450_v19  ;;  %v2581_v27 = vpop.f32.mrb[79].mxu0  ;;  %v2649_v34 = vpop.f32.mrb[79].mxu1 }
 0x1c0   : > { %v1745_v28 = vadd.f32 %v3171_v49, %v1744_v22 }
 0x1c1   : > { %2310 = vst [vmem:[%s3290_s28 + $0x28] sm:$0xff] %v2269_v23   ;;  %v1540_v29 = vmax.f32 %v3225_v52, %v1514_v25  ;;  %v1515_v30 = vmax.f32 %v1451_v26, 0.0 }
 0x1c2   : > { %v1809_v18 = vmax.f32 %v1745_v28, 0.0 }
 0x1c3   : > { %v1834_v56 = vmax.f32 %v1540_v29, %v1808_v31  ;;  %v1541_v32 = vmax.f32 %v3227_v57, %v1515_v30 }
 0x1c4   : > { %v1455_v53 = vpop.f32.mrb[80].mxu0  ;;  %v1749_v35 = vpop.f32.mrb[80].mxu1 }
 0x1c5   : > { %v1835_v37 = vmax.f32 %v1541_v32, %v1809_v18  ;;  %v1456_v21 = vadd.f32 %v3171_v49, %v1455_v53  ;;  %v1750_v40 = vadd.f32 %v3171_v49, %v1749_v35  ;;  %v2584_v41 = vpop.f32.mrb[81].mxu0  ;;  %v2652_v42 = vpop.f32.mrb[81].mxu1 }
 0x1c6   : > { %v1458_v43 = vpop.f32.mrb[82].mxu0  ;;  %v1752_v44 = vpop.f32.mrb[82].mxu1 }
 0x1c7   : > { %v2274_v46 = vpack.c.bf16 %v1835_v37, %v1834_v56  ;;  %v1516_v47 = vmax.f32 %v1456_v21, 0.0  ;;  %v1810_v52 = vmax.f32 %v1750_v40, 0.0  ;;  %v1459_v50 = vadd.f32 %v3171_v49, %v1458_v43  ;;  %v2585_v51 = vpop.f32.mrb[83].mxu0  ;;  %v2653_v57 = vpop.f32.mrb[83].mxu1 }
 0x1c8   : > { %v1753_v54 = vadd.f32 %v3171_v49, %v1752_v44 }
 0x1c9   : > { %2311 = vst [vmem:[%s3290_s28 + $0x30] sm:$0xff] %v2274_v46   ;;  %v1542_v55 = vmax.f32 %v3233_v10, %v1516_v47  ;;  %v1517_v58 = vmax.f32 %v1459_v50, 0.0 }
 0x1ca   : > { %v1811_v11 = vmax.f32 %v1753_v54, 0.0 }
 0x1cb   : > { %v1836_v0 = vmax.f32 %v1542_v55, %v1810_v52  ;;  %v1543_v60 = vmax.f32 %v3235_v15, %v1517_v58 }
 0x1cc   : > { %v1463_v3 = vpop.f32.mrb[84].mxu0  ;;  %v1757_v61 = vpop.f32.mrb[84].mxu1 }
 0x1cd   : > { %v1837_v14 = vmax.f32 %v1543_v60, %v1811_v11  ;;  %v1464_v63 = vadd.f32 %v3171_v49, %v1463_v3  ;;  %v1758_v36 = vadd.f32 %v3171_v49, %v1757_v61  ;;  %v2588_v1 = vpop.f32.mrb[85].mxu0  ;;  %v2656_v2 = vpop.f32.mrb[85].mxu1 }
 0x1ce   : > { %v1466_v39 = vpop.f32.mrb[86].mxu0  ;;  %v1760_v4 = vpop.f32.mrb[86].mxu1 }
 0x1cf   : > { %v2279_v5 = vpack.c.bf16 %v1837_v14, %v1836_v0  ;;  %v1518_v6 = vmax.f32 %v1464_v63, 0.0  ;;  %v1812_v10 = vmax.f32 %v1758_v36, 0.0  ;;  %v1467_v7 = vadd.f32 %v3171_v49, %v1466_v39  ;;  %v2589_v9 = vpop.f32.mrb[87].mxu0  ;;  %v2657_v15 = vpop.f32.mrb[87].mxu1 }
 0x1d0   : > { %v1761_v12 = vadd.f32 %v3171_v49, %v1760_v4 }
 0x1d1   : > { %2312 = vst [vmem:[%s3290_s28 + $0x38] sm:$0xff] %v2279_v5   ;;  %v1544_v16 = vmax.f32 %v3241_v33, %v1518_v6  ;;  %v1519_v17 = vmax.f32 %v1467_v7, 0.0 }
 0x1d2   : > { %v1813_v23 = vmax.f32 %v1761_v12, 0.0 }
 0x1d3   : > { %v1838_v19 = vmax.f32 %v1544_v16, %v1812_v10  ;;  %v1545_v22 = vmax.f32 %v3243_v38, %v1519_v17 }
 0x1d4   : > { %v1471_v25 = vpop.f32.mrb[88].mxu0  ;;  %v1765_v31 = vpop.f32.mrb[88].mxu1 }
 0x1d5   : > { %v1839_v26 = vmax.f32 %v1545_v22, %v1813_v23  ;;  %v1472_v27 = vadd.f32 %v3171_v49, %v1471_v25  ;;  %v1766_v34 = vadd.f32 %v3171_v49, %v1765_v31  ;;  %v2592_v28 = vpop.f32.mrb[89].mxu0  ;;  %v2660_v29 = vpop.f32.mrb[89].mxu1 }
 0x1d6   : > { %v1474_v30 = vpop.f32.mrb[90].mxu0  ;;  %v1768_v56 = vpop.f32.mrb[90].mxu1 }
 0x1d7   : > { %v2284_v32 = vpack.c.bf16 %v1839_v26, %v1838_v19  ;;  %v1520_v18 = vmax.f32 %v1472_v27, 0.0  ;;  %v1814_v33 = vmax.f32 %v1766_v34, 0.0  ;;  %v1475_v53 = vadd.f32 %v3171_v49, %v1474_v30  ;;  %v2593_v35 = vpop.f32.mrb[91].mxu0  ;;  %v2661_v38 = vpop.f32.mrb[91].mxu1 }
 0x1d8   : > { %v1769_v37 = vadd.f32 %v3171_v49, %v1768_v56 }
 0x1d9   : > { %2313 = vst [vmem:[%s3290_s28 + $0x40] sm:$0xff] %v2284_v32   ;;  %v1546_v21 = vmax.f32 %v3249_v59, %v1520_v18  ;;  %v1521_v40 = vmax.f32 %v1475_v53, 0.0 }
 0x1da   : > { %v1815_v43 = vmax.f32 %v1769_v37, 0.0 }
 0x1db   : > { %v1840_v41 = vmax.f32 %v1546_v21, %v1814_v33  ;;  %v1547_v42 = vmax.f32 %v3251_v62, %v1521_v40 }
 0x1dc   : > { %v1479_v44 = vpop.f32.mrb[92].mxu0  ;;  %v1773_v46 = vpop.f32.mrb[92].mxu1 }
 0x1dd   : > { %v1841_v47 = vmax.f32 %v1547_v42, %v1815_v43  ;;  %v1480_v52 = vadd.f32 %v3171_v49, %v1479_v44  ;;  %v1774_v50 = vadd.f32 %v3171_v49, %v1773_v46  ;;  %v2596_v51 = vpop.f32.mrb[93].mxu0  ;;  %v2664_v57 = vpop.f32.mrb[93].mxu1 }
 0x1de   : > { %v1482_v54 = vpop.f32.mrb[94].mxu0  ;;  %v1776_v55 = vpop.f32.mrb[94].mxu1 }
 0x1df   : > { %v2289_v58 = vpack.c.bf16 %v1841_v47, %v1840_v41  ;;  %v1522_v0 = vmax.f32 %v1480_v52, 0.0  ;;  %v1816_v59 = vmax.f32 %v1774_v50, 0.0  ;;  %v1483_v60 = vadd.f32 %v3171_v49, %v1482_v54  ;;  %v2597_v11 = vpop.f32.mrb[95].mxu0  ;;  %v2665_v62 = vpop.f32.mrb[95].mxu1 }
 0x1e0   : > { %v1777_v3 = vadd.f32 %v3171_v49, %v1776_v55 }
 0x1e1   : > { %2314 = vst [vmem:[%s3290_s28 + $0x48] sm:$0xff] %v2289_v58   ;;  %v1548_v61 = vmax.f32 %v3257_v20, %v1522_v0  ;;  %v1523_v14 = vmax.f32 %v1483_v60, 0.0 }
 0x1e2   : > { %v1817_v1 = vmax.f32 %v1777_v3, 0.0 }
 0x1e3   : > { %v1842_v63 = vmax.f32 %v1548_v61, %v1816_v59  ;;  %v1549_v36 = vmax.f32 %v3259_v24, %v1523_v14 }
 0x1e4   : > { %v1487_v2 = vpop.f32.mrb[96].mxu0  ;;  %v1781_v39 = vpop.f32.mrb[96].mxu1 }
 0x1e5   : > { %v1843_v4 = vmax.f32 %v1549_v36, %v1817_v1  ;;  %v1488_v5 = vadd.f32 %v3171_v49, %v1487_v2  ;;  %v1782_v6 = vadd.f32 %v3171_v49, %v1781_v39  ;;  %v2600_v10 = vpop.f32.mrb[97].mxu0  ;;  %v2668_v7 = vpop.f32.mrb[97].mxu1 }
 0x1e6   : > { %v1490_v9 = vpop.f32.mrb[98].mxu0  ;;  %v1784_v15 = vpop.f32.mrb[98].mxu1 }
 0x1e7   : > { %v2294_v12 = vpack.c.bf16 %v1843_v4, %v1842_v63  ;;  %v1524_v16 = vmax.f32 %v1488_v5, 0.0  ;;  %v1818_v20 = vmax.f32 %v1782_v6, 0.0  ;;  %v1491_v17 = vadd.f32 %v3171_v49, %v1490_v9  ;;  %v2601_v19 = vpop.f32.mrb[99].mxu0  ;;  %v2669_v24 = vpop.f32.mrb[99].mxu1 }
 0x1e8   : > { %v1785_v22 = vadd.f32 %v3171_v49, %v1784_v15 }
 0x1e9   : > { %2315 = vst [vmem:[%s3290_s28 + $0x50] sm:$0xff] %v2294_v12   ;;  %v1550_v23 = vmax.f32 %v3265_v45, %v1524_v16  ;;  %v1525_v25 = vmax.f32 %v1491_v17, 0.0 }
 0x1ea   : > { %v1819_v27 = vmax.f32 %v1785_v22, 0.0 }
 0x1eb   : > { %v1844_v31 = vmax.f32 %v1550_v23, %v1818_v20  ;;  %v1551_v26 = vmax.f32 %v3267_v48, %v1525_v25  ;;  %v2762_v48 = vld [vmem:[%s3388_s2] ss:$0 sm:$0xff] }
 0x1ec   : > { %v1495_v34 = vpop.f32.mrb[100].mxu0  ;;  %v1789_v28 = vpop.f32.mrb[100].mxu1 }
 0x1ed   : > { %v1845_v29 = vmax.f32 %v1551_v26, %v1819_v27  ;;  %v1496_v30 = vadd.f32 %v3171_v49, %v1495_v34  ;;  %v1790_v56 = vadd.f32 %v3171_v49, %v1789_v28  ;;  %v2604_v32 = vpop.f32.mrb[101].mxu0  ;;  %v2672_v18 = vpop.f32.mrb[101].mxu1 }
 0x1ee   : > { %v1498_v33 = vpop.f32.mrb[102].mxu0  ;;  %v1792_v53 = vpop.f32.mrb[102].mxu1 }
 0x1ef   : > { %v2299_v35 = vpack.c.bf16 %v1845_v29, %v1844_v31  ;;  %v1526_v45 = vmax.f32 %v1496_v30, 0.0  ;;  %v1820_v38 = vmax.f32 %v1790_v56, 0.0  ;;  %v1499_v37 = vadd.f32 %v2762_v48, %v1498_v33  ;;  %v2605_v21 = vpop.f32.mrb[103].mxu0  ;;  %v2673_v40 = vpop.f32.mrb[103].mxu1 }
 0x1f0   : > { %v1793_v41 = vadd.f32 %v2762_v48, %v1792_v53 }
 0x1f1   : > { %2316 = vst [vmem:[%s3290_s28 + $0x58] sm:$0xff] %v2299_v35   ;;  %v1552_v42 = vmax.f32 %v3275_v8, %v1526_v45  ;;  %v1527_v49 = vmax.f32 %v1499_v37, 0.0 }
 0x1f2   : > { %v1821_v46 = vmax.f32 %v1793_v41, 0.0 }
 0x1f3   : > { %v1846_v43 = vmax.f32 %v1552_v42, %v1820_v38  ;;  %v1553_v44 = vmax.f32 %v3277_v13, %v1527_v49 }
 0x1f5   : > { %v1847_v47 = vmax.f32 %v1553_v44, %v1821_v46 }
 0x1f7   : > { %v2304_v52 = vpack.c.bf16 %v1847_v47, %v1846_v43 }
 0x1f9   : > { %2317 = vst [vmem:[%s3290_s28 + $0x60] sm:$0xff] %v2304_v52  }
 0x1fa PF: > { %p10_p9 = scmp.ge.s32.totalorder %s2826_s16, 4   ;;  %s3390_s12 = smov %s2781_s13 }
 0x1fb   : > { %s3391_s13 = smov %s2835_s19  ;;  %s3392_s14 = smov %s2826_s16 }
 0x1fc   :  { %12 = sbr.rel (!%p10_p9) target bundleno = 2 (0x2), region = 111 }

// kernel: lenet_forward.4
= control target key start
LH: loop header
LB: loop body
LE: loop exit
PB: predicated region body
PF: predicated region fallthrough
CT: control target
= control target key end

     0   :  { %s1713_s12 = smov 0   ;;  %s1715_s13 = smov 0   ;;  %s2176_s0 = inlined_call_operand.vmem [shape: bf16[4,64,512], index: 0, kind: input, shape index: {}]   ;;  %s2177_s1 = inlined_call_operand.vmem [shape: bf16[512,128], index: 1, kind: input, shape index: {}]   ;;  %s2178_s2 = inlined_call_operand.vmem [shape: f32[1,128], index: 2, kind: input, shape index: {}]   ;;  %s2179_s3 = inlined_call_operand.vmem [shape: bf16[64,128], index: 3, kind: output, shape index: {}]  }
   0x1   :  { %s1717_s14 = smov 0  }
   0x2 LB: > { %s1217_s15 = sadd.s32 4294967295, %s1691_s14   ;;  %s1730_s16 = sadd.s32 1, %s1691_s14   ;;  %s1691_s14 = sphi %s1717_s14, %s2182_s14   ;;  %s1687_s13 = sphi %s1715_s13, %s2181_s13   ;;  %s1683_s12 = sphi %s1713_s12, %s2180_s12  }
   0x3   : > { %s17_s17 = ssub.s32 %s1691_s14, %s1730_s16  ;;  %s20_s18 = sadd.s32 1, %s1687_s13 }
   0x4   : > { %p18_p0 = scmp.eq.s32.totalorder %s17_s17, 0  ;;  %p27_p1 = scmp.ne.s32.totalorder %s1687_s13, %s1683_s12 }
   0x5   : > { %p28_p2 = scmp.eq.s32.totalorder %s1691_s14, 0  ;;  %p1220_p4 = scmp.ge.s32.totalorder %s1691_s14, 2 }
   0x6   : > { %s1739_s19 = scalar_select %p18_p0, %s1687_s13, %s20_s18  }
   0x7   : > { %p29_p3 = por %p28_p2, %p27_p1  ;;  %127 = sbr.rel (%p1220_p4) target bundleno = 34 (0x22), region = 24 }
   0xe   : > { %130 = sbr.rel (!%p29_p3) target bundleno = 34 (0x22), region = 28  ;;  %s132_s20 = sand.u32 (%p29_p3), 1, %s1687_s13  }
   0xf   : > { %s1325_s21 = sshll.u32 (%p29_p3), %s1691_s14, 6  ;;  %s1221_s22 = sshll.u32 (%p29_p3), %s132_s20, 8 }
  0x10   : > { %s1747_s25 = scalar_lea.vmem (%p29_p3), %s2176_s0, %s1325_s21  ;;  %s1752_s26 = scalar_lea.vmem (%p29_p3), [#allocation2], %s1221_s22 }
  0x11   : > { %v151_v0 = vld [vmem:[%s1747_s25] sm:$0xff] (%p29_p3)  ;;  %v153_v1 = vld [vmem:[%s1747_s25 + $0x8] sm:$0xff] (%p29_p3)  ;;  %v155_v2 = vld [vmem:[%s1747_s25 + $0x10] sm:$0xff] (%p29_p3) }
  0x12   : > { %152 = vst [vmem:[%s1752_s26] sm:$0xff] (%p29_p3), %v151_v0  ;;  %154 = vst [vmem:[%s1752_s26 + $0x8] sm:$0xff] (%p29_p3), %v153_v1  ;;  %v157_v3 = vld [vmem:[%s1747_s25 + $0x18] sm:$0xff] (%p29_p3)  ;;  %v159_v4 = vld [vmem:[%s1747_s25 + $0x20] sm:$0xff] (%p29_p3) }
  0x13   : > { %156 = vst [vmem:[%s1752_s26 + $0x10] sm:$0xff] (%p29_p3), %v155_v2  ;;  %v161_v5 = vld [vmem:[%s1747_s25 + $0x28] sm:$0xff] (%p29_p3)  ;;  %158 = vst [vmem:[%s1752_s26 + $0x18] sm:$0xff] (%p29_p3), %v157_v3  ;;  %v163_v6 = vld [vmem:[%s1747_s25 + $0x30] sm:$0xff] (%p29_p3) }
  0x14   : > { %160 = vst [vmem:[%s1752_s26 + $0x20] sm:$0xff] (%p29_p3), %v159_v4  ;;  %162 = vst [vmem:[%s1752_s26 + $0x28] sm:$0xff] (%p29_p3), %v161_v5  ;;  %v165_v7 = vld [vmem:[%s1747_s25 + $0x38] sm:$0xff] (%p29_p3)  ;;  %v167_v8 = vld [vmem:[%s1747_s25 + $0x80] sm:$0xff] (%p29_p3) }
  0x15   : > { %164 = vst [vmem:[%s1752_s26 + $0x30] sm:$0xff] %v163_v6  ;;  %166 = vst [vmem:[%s1752_s26 + $0x38] sm:$0xff] %v165_v7  ;;  %v169_v9 = vld [vmem:[%s1747_s25 + $0x88] sm:$0xff]  ;;  %v171_v10 = vld [vmem:[%s1747_s25 + $0x90] sm:$0xff] }
  0x16   : > { %168 = vst [vmem:[%s1752_s26 + $0x40] sm:$0xff] %v167_v8  ;;  %v173_v11 = vld [vmem:[%s1747_s25 + $0x98] sm:$0xff]  ;;  %170 = vst [vmem:[%s1752_s26 + $0x48] sm:$0xff] %v169_v9  ;;  %v175_v12 = vld [vmem:[%s1747_s25 + $0xa0] sm:$0xff] }
  0x17   : > { %172 = vst [vmem:[%s1752_s26 + $0x50] sm:$0xff] %v171_v10  ;;  %174 = vst [vmem:[%s1752_s26 + $0x58] sm:$0xff] %v173_v11  ;;  %v177_v13 = vld [vmem:[%s1747_s25 + $0xa8] sm:$0xff]  ;;  %v179_v14 = vld [vmem:[%s1747_s25 + $0xb0] sm:$0xff] }
  0x18   : > { %176 = vst [vmem:[%s1752_s26 + $0x60] sm:$0xff] %v175_v12  ;;  %178 = vst [vmem:[%s1752_s26 + $0x68] sm:$0xff] %v177_v13  ;;  %v181_v15 = vld [vmem:[%s1747_s25 + $0xb8] sm:$0xff]  ;;  %v183_v16 = vld [vmem:[%s1747_s25 + $0x100] sm:$0xff] }
  0x19   : > { %180 = vst [vmem:[%s1752_s26 + $0x70] sm:$0xff] %v179_v14  ;;  %v185_v17 = vld [vmem:[%s1747_s25 + $0x108] sm:$0xff]  ;;  %182 = vst [vmem:[%s1752_s26 + $0x78] sm:$0xff] %v181_v15  ;;  %v187_v18 = vld [vmem:[%s1747_s25 + $0x110] sm:$0xff] }
  0x1a   : > { %184 = vst [vmem:[%s1752_s26 + $0x80] sm:$0xff] %v183_v16  ;;  %186 = vst [vmem:[%s1752_s26 + $0x88] sm:$0xff] %v185_v17  ;;  %v189_v19 = vld [vmem:[%s1747_s25 + $0x118] sm:$0xff]  ;;  %v191_v20 = vld [vmem:[%s1747_s25 + $0x120] sm:$0xff] }
  0x1b   : > { %188 = vst [vmem:[%s1752_s26 + $0x90] sm:$0xff] %v187_v18  ;;  %190 = vst [vmem:[%s1752_s26 + $0x98] sm:$0xff] %v189_v19  ;;  %v193_v21 = vld [vmem:[%s1747_s25 + $0x128] sm:$0xff]  ;;  %v195_v22 = vld [vmem:[%s1747_s25 + $0x130] sm:$0xff] }
  0x1c   : > { %192 = vst [vmem:[%s1752_s26 + $0xa0] sm:$0xff] %v191_v20  ;;  %v197_v23 = vld [vmem:[%s1747_s25 + $0x138] sm:$0xff]  ;;  %194 = vst [vmem:[%s1752_s26 + $0xa8] sm:$0xff] %v193_v21  ;;  %v199_v24 = vld [vmem:[%s1747_s25 + $0x180] sm:$0xff] }
  0x1d   : > { %196 = vst [vmem:[%s1752_s26 + $0xb0] sm:$0xff] %v195_v22  ;;  %198 = vst [vmem:[%s1752_s26 + $0xb8] sm:$0xff] %v197_v23  ;;  %v201_v25 = vld [vmem:[%s1747_s25 + $0x188] sm:$0xff]  ;;  %v203_v26 = vld [vmem:[%s1747_s25 + $0x190] sm:$0xff] }
  0x1e   : > { %200 = vst [vmem:[%s1752_s26 + $0xc0] sm:$0xff] %v199_v24  ;;  %202 = vst [vmem:[%s1752_s26 + $0xc8] sm:$0xff] %v201_v25  ;;  %v205_v27 = vld [vmem:[%s1747_s25 + $0x198] sm:$0xff]  ;;  %v207_v28 = vld [vmem:[%s1747_s25 + $0x1a0] sm:$0xff] }
  0x1f   : > { %204 = vst [vmem:[%s1752_s26 + $0xd0] sm:$0xff] %v203_v26  ;;  %v209_v29 = vld [vmem:[%s1747_s25 + $0x1a8] sm:$0xff]  ;;  %206 = vst [vmem:[%s1752_s26 + $0xd8] sm:$0xff] %v205_v27  ;;  %v211_v30 = vld [vmem:[%s1747_s25 + $0x1b0] sm:$0xff] }
  0x20   : > { %208 = vst [vmem:[%s1752_s26 + $0xe0] sm:$0xff] %v207_v28  ;;  %210 = vst [vmem:[%s1752_s26 + $0xe8] sm:$0xff] %v209_v29  ;;  %v213_v31 = vld [vmem:[%s1747_s25 + $0x1b8] sm:$0xff] }
  0x21   : > { %212 = vst [vmem:[%s1752_s26 + $0xf0] sm:$0xff] %v211_v30  ;;  %214 = vst [vmem:[%s1752_s26 + $0xf8] sm:$0xff] %v213_v31 }
  0x22 PF: > { %p1225_p5 = scmp.ge.s32.totalorder %s1691_s14, 1  ;;  %p219_p6 = scmp.lt.s32.totalorder %s1691_s14, 3 }
  0x24   : > { %p220_p7 = pnand %p1225_p5, %p219_p6 }
  0x25   : > { %v1820_v32 = vld [vmem:[%s2177_s1 + $0x40] sm:$0xff] (!%p220_p7)   ;;  %v1843_v36 = vld [vmem:[%s2177_s1 + $0x48] sm:$0xff] (!%p220_p7)   ;;  %v1867_v40 = vld [vmem:[%s2177_s1 + $0x50] sm:$0xff] (!%p220_p7)   ;;  %s226_s6 = sand.u32 (!%p220_p7), 1, %s1683_s12   ;;  %s1227_s5 = sshll.u32 (!%p220_p7), %s1217_s15, 2 }
  0x26   : > { %223 = sbr.rel (%p220_p7) target bundleno = 403 (0x193), region = 51  ;;  %v1825_v33 = vld [vmem:[%s2177_s1 + $0xc0] sm:$0xff] (!%p220_p7)   ;;  %1341 = vmatprep.subr.bf16.mxu0 (!%p220_p7), %v1820_v32  ;;  %v1849_v37 = vld [vmem:[%s2177_s1 + $0xc8] sm:$0xff] (!%p220_p7)   ;;  %v1873_v41 = vld [vmem:[%s2177_s1 + $0xd0] sm:$0xff] (!%p220_p7)   ;;  %s1226_s12 = sshll.u32 (!%p220_p7), %s226_s6, 8 }
  0x27   : > { %v1831_v34 = vld [vmem:[%s2177_s1] sm:$0xff] (!%p220_p7)   ;;  %1369 = vmatprep.subr.bf16.mxu1 (!%p220_p7), %v1825_v33  ;;  %v1855_v38 = vld [vmem:[%s2177_s1 + $0x8] sm:$0xff] (!%p220_p7)   ;;  %v1879_v42 = vld [vmem:[%s2177_s1 + $0x10] sm:$0xff] (!%p220_p7)   ;;  %s2009_s29 = scalar_lea.vmem (!%p220_p7), [#allocation2], %s1226_s12  ;;  %p251_p8 = scmp.lt.s32.totalorder (!%p220_p7), %s1227_s5, 7 }
  0x28   : > { %v1837_v35 = vld [vmem:[%s2177_s1 + $0x80] sm:$0xff] (!%p220_p7)   ;;  %1342 = vmatpush3.bf16.msra.mxu0 (!%p220_p7), %v1831_v34  ;;  %v1861_v39 = vld [vmem:[%s2177_s1 + $0x88] sm:$0xff] (!%p220_p7)   ;;  %v1885_v43 = vld [vmem:[%s2177_s1 + $0x90] sm:$0xff] (!%p220_p7)  }
  0x29   : > { %1370 = vmatpush3.bf16.msra.mxu1 (!%p220_p7), %v1837_v35  ;;  %1343 = vmatprep.subr.bf16.mxu0 (!%p220_p7), %v1843_v36  ;;  %v1891_v44 = vld [vmem:[%s2177_s1 + $0x58] sm:$0xff] (!%p220_p7)   ;;  %v1915_v48 = vld [vmem:[%s2177_s1 + $0x60] sm:$0xff] (!%p220_p7)   ;;  %v1939_v52 = vld [vmem:[%s2177_s1 + $0x68] sm:$0xff] (!%p220_p7)  }
  0x2a   : > { %1371 = vmatprep.subr.bf16.mxu1 (!%p220_p7), %v1849_v37  ;;  %v1897_v45 = vld [vmem:[%s2177_s1 + $0xd8] sm:$0xff] (!%p220_p7)   ;;  %v1921_v49 = vld [vmem:[%s2177_s1 + $0xe0] sm:$0xff] (!%p220_p7)   ;;  %v1945_v53 = vld [vmem:[%s2177_s1 + $0xe8] sm:$0xff] (!%p220_p7)  }
  0x2b   : > { %v1903_v46 = vld [vmem:[%s2177_s1 + $0x18] sm:$0xff] (!%p220_p7)   ;;  %v1927_v50 = vld [vmem:[%s2177_s1 + $0x20] sm:$0xff] (!%p220_p7)   ;;  %v1951_v54 = vld [vmem:[%s2177_s1 + $0x28] sm:$0xff] (!%p220_p7)  }
  0x2c   : > { %1344 = vmatpush3.bf16.msra.mxu0 (!%p220_p7), %v1855_v38  ;;  %v1909_v47 = vld [vmem:[%s2177_s1 + $0x98] sm:$0xff] (!%p220_p7)   ;;  %v1933_v51 = vld [vmem:[%s2177_s1 + $0xa0] sm:$0xff] (!%p220_p7)   ;;  %v1957_v55 = vld [vmem:[%s2177_s1 + $0xa8] sm:$0xff] (!%p220_p7)  }
  0x2d   : > { %1372 = vmatpush3.bf16.msra.mxu1 %v1861_v39  ;;  %1345 = vmatprep.subr.bf16.mxu0 %v1867_v40  ;;  %v1964_v56 = vld [vmem:[%s2177_s1 + $0x70] sm:$0xff]   ;;  %v1988_v60 = vld [vmem:[%s2177_s1 + $0x78] sm:$0xff]   ;;  %s2184_s5 = smov (!%p251_p8, %s1227_s5), 7 }
  0x2e   : > { %1373 = vmatprep.subr.bf16.mxu1 %v1873_v41  ;;  %v1970_v57 = vld [vmem:[%s2177_s1 + $0xf0] sm:$0xff]   ;;  %v1994_v61 = vld [vmem:[%s2177_s1 + $0xf8] sm:$0xff]   ;;  %s1228_s14 = sshll.u32 %s2184_s5, 2 }
  0x2f   : > { %v1976_v58 = vld [vmem:[%s2177_s1 + $0x30] sm:$0xff]   ;;  %v2000_v62 = vld [vmem:[%s2177_s1 + $0x38] sm:$0xff]   ;;  %s254_s7 = scalar_lea.vmem %s2179_s3, %s1228_s14 }
  0x30   : > { %1346 = vmatpush3.bf16.msra.mxu0 %v1879_v42  ;;  %v1982_v59 = vld [vmem:[%s2177_s1 + $0xb0] sm:$0xff]   ;;  %v2006_v63 = vld [vmem:[%s2177_s1 + $0xb8] sm:$0xff]  }
  0x31   : > { %1374 = vmatpush3.bf16.msra.mxu1 %v1885_v43  ;;  %1347 = vmatprep.subr.bf16.mxu0 %v1891_v44  ;;  %v1621_v0 = vld [vmem:[%s2009_s29] ss:$16 sps:$4 sm:$0xff]   ;;  %v1623_v1 = vld [vmem:[%s2009_s29 + $0x4] ss:$16 sps:$4 sm:$0xff]   ;;  %v1624_v2 = vld [vmem:[%s2009_s29 + $0x8] ss:$16 sps:$4 sm:$0xff]  }
  0x32   : > { %1375 = vmatprep.subr.bf16.mxu1 %v1897_v45  ;;  %v1626_v3 = vld [vmem:[%s2009_s29 + $0xc] ss:$16 sps:$4 sm:$0xff]   ;;  %600 = vmatprep.mubr.bf16.mxu0 %v1623_v1  ;;  %v1627_v4 = vld [vmem:[%s2009_s29 + $0x24] ss:$16 sps:$4 sm:$0xff]   ;;  %v1629_v6 = vld [vmem:[%s2009_s29 + $0x20] ss:$16 sps:$4 sm:$0xff]  }
  0x33   : > { %649 = vmatprep.mubr.bf16.mxu1 %v1626_v3  ;;  %v1630_v5 = vld [vmem:[%s2009_s29 + $0x2c] ss:$16 sps:$4 sm:$0xff]   ;;  %v1632_v7 = vld [vmem:[%s2009_s29 + $0x28] ss:$16 sps:$4 sm:$0xff]   ;;  %v1635_v8 = vld [vmem:[%s2009_s29 + $0x44] ss:$16 sps:$4 sm:$0xff]  }
  0x34   : > { %1348 = vmatpush3.bf16.msra.mxu0 %v1903_v46  ;;  %v1638_v9 = vld [vmem:[%s2009_s29 + $0x4c] ss:$16 sps:$4 sm:$0xff]   ;;  %v1633_v10 = vld [vmem:[%s2009_s29 + $0x40] ss:$16 sps:$4 sm:$0xff]   ;;  %v1636_v11 = vld [vmem:[%s2009_s29 + $0x48] ss:$16 sps:$4 sm:$0xff]  }
  0x35   : > { %1376 = vmatpush3.bf16.msra.mxu1 %v1909_v47  ;;  %1349 = vmatprep.subr.bf16.mxu0 %v1915_v48  ;;  %v1639_v12 = vld [vmem:[%s2009_s29 + $0x64] ss:$16 sps:$4 sm:$0xff]   ;;  %v1642_v13 = vld [vmem:[%s2009_s29 + $0x6c] ss:$16 sps:$4 sm:$0xff]   ;;  %v1641_v14 = vld [vmem:[%s2009_s29 + $0x60] ss:$16 sps:$4 sm:$0xff]  }
  0x36   : > { %1377 = vmatprep.subr.bf16.mxu1 %v1921_v49  ;;  %v1644_v15 = vld [vmem:[%s2009_s29 + $0x68] ss:$16 sps:$4 sm:$0xff]   ;;  %v1647_v16 = vld [vmem:[%s2009_s29 + $0x84] ss:$16 sps:$4 sm:$0xff]   ;;  %v1650_v17 = vld [vmem:[%s2009_s29 + $0x8c] ss:$16 sps:$4 sm:$0xff]  }
  0x37   : > { %v1645_v18 = vld [vmem:[%s2009_s29 + $0x80] ss:$16 sps:$4 sm:$0xff]   ;;  %v1648_v19 = vld [vmem:[%s2009_s29 + $0x88] ss:$16 sps:$4 sm:$0xff]   ;;  %v1651_v20 = vld [vmem:[%s2009_s29 + $0xa4] ss:$16 sps:$4 sm:$0xff]  }
  0x38   : > { %1350 = vmatpush3.bf16.msra.mxu0 %v1927_v50  ;;  %v1654_v21 = vld [vmem:[%s2009_s29 + $0xac] ss:$16 sps:$4 sm:$0xff]   ;;  %v1653_v22 = vld [vmem:[%s2009_s29 + $0xa0] ss:$16 sps:$4 sm:$0xff]   ;;  %v1656_v23 = vld [vmem:[%s2009_s29 + $0xa8] ss:$16 sps:$4 sm:$0xff]  }
  0x39   : > { %1378 = vmatpush3.bf16.msra.mxu1 %v1933_v51  ;;  %1351 = vmatprep.subr.bf16.mxu0 %v1939_v52  ;;  %v1659_v24 = vld [vmem:[%s2009_s29 + $0xc4] ss:$16 sps:$4 sm:$0xff]   ;;  %v1662_v25 = vld [vmem:[%s2009_s29 + $0xcc] ss:$16 sps:$4 sm:$0xff]   ;;  %v1657_v26 = vld [vmem:[%s2009_s29 + $0xc0] ss:$16 sps:$4 sm:$0xff]  }
  0x3a   : > { %1379 = vmatprep.subr.bf16.mxu1 %v1945_v53  ;;  %v1660_v27 = vld [vmem:[%s2009_s29 + $0xc8] ss:$16 sps:$4 sm:$0xff]   ;;  %v1663_v28 = vld [vmem:[%s2009_s29 + $0xe4] ss:$16 sps:$4 sm:$0xff]   ;;  %v1665_v29 = vld [vmem:[%s2009_s29 + $0xec] ss:$16 sps:$4 sm:$0xff]  }
  0x3b   : > { %v1667_v30 = vld [vmem:[%s2009_s29 + $0xe0] ss:$16 sps:$4 sm:$0xff]   ;;  %v1668_v31 = vld [vmem:[%s2009_s29 + $0xe8] ss:$16 sps:$4 sm:$0xff]  }
  0x3c   : > { %1352 = vmatpush3.bf16.msra.mxu0 %v1951_v54 }
  0x3d   : > { %1380 = vmatpush3.bf16.msra.mxu1 %v1957_v55  ;;  %1353 = vmatprep.subr.bf16.mxu0 %v1964_v56 }
  0x3e   : > { %1381 = vmatprep.subr.bf16.mxu1 %v1970_v57 }
  0x40   : > { %1354 = vmatpush3.bf16.msra.mxu0 %v1976_v58 }
  0x41   : > { %1382 = vmatpush3.bf16.msra.mxu1 %v1982_v59  ;;  %1355 = vmatprep.subr.bf16.mxu0 %v1988_v60 }
  0x42   : > { %1383 = vmatprep.subr.bf16.mxu1 %v1994_v61 }
  0x44   : > { %1356 = vmatpush3.bf16.msra.mxu0 %v2000_v62 }
  0x45   : > { %1384 = vmatpush3.bf16.msra.mxu1 %v2006_v63  ;;  %1397 = vmatprep.subr.bf16.mxu0 %v1820_v32 }
  0x46   : > { %1425 = vmatprep.subr.bf16.mxu1 %v1825_v33 }
  0x47   : > { %601 = vmatmul.mubr.bf16.vlgmr.msra.gmra.mrb[0].mxu0 %v1621_v0 }
  0x48   : > { %650 = vmatmul.mubr.bf16.vlgmr.msra.gmra.mrb[0].mxu1 %v1624_v2  ;;  %1398 = vmatpush3.bf16.msra.mxu0 %v1831_v34 }
  0x49   : > { %1426 = vmatpush3.bf16.msra.mxu1 %v1837_v35  ;;  %1399 = vmatprep.subr.bf16.mxu0 %v1843_v36 }
  0x4a   : > { %1427 = vmatprep.subr.bf16.mxu1 %v1849_v37  ;;  %608 = vmatprep.mubr.bf16.mxu0 %v1627_v4 }
  0x4b   : > { %657 = vmatprep.mubr.bf16.mxu1 %v1630_v5 }
  0x4c   : > { %1400 = vmatpush3.bf16.msra.mxu0 %v1855_v38 }
  0x4d   : > { %1428 = vmatpush3.bf16.msra.mxu1 %v1861_v39  ;;  %1401 = vmatprep.subr.bf16.mxu0 %v1867_v40 }
  0x4e   : > { %1429 = vmatprep.subr.bf16.mxu1 %v1873_v41 }
  0x4f   : > { %609 = vmatmul.mubr.bf16.gmra.mrb[4].mxu0 %v1629_v6 }
  0x50   : > { %1402 = vmatpush3.bf16.msra.mxu0 %v1879_v42  ;;  %658 = vmatmul.mubr.bf16.gmra.mrb[4].mxu1 %v1632_v7 }
  0x51   : > { %1430 = vmatpush3.bf16.msra.mxu1 %v1885_v43  ;;  %1403 = vmatprep.subr.bf16.mxu0 %v1891_v44 }
  0x52   : > { %1431 = vmatprep.subr.bf16.mxu1 %v1897_v45  ;;  %751 = vmatprep.mubr.bf16.mxu0 %v1635_v8 }
  0x53   : > { %800 = vmatprep.mubr.bf16.mxu1 %v1638_v9 }
  0x54   : > { %1404 = vmatpush3.bf16.msra.mxu0 %v1903_v46 }
  0x55   : > { %1432 = vmatpush3.bf16.msra.mxu1 %v1909_v47  ;;  %1405 = vmatprep.subr.bf16.mxu0 %v1915_v48 }
  0x56   : > { %1433 = vmatprep.subr.bf16.mxu1 %v1921_v49 }
  0x58   : > { %1406 = vmatpush3.bf16.msra.mxu0 %v1927_v50 }
  0x59   : > { %1434 = vmatpush3.bf16.msra.mxu1 %v1933_v51  ;;  %1407 = vmatprep.subr.bf16.mxu0 %v1939_v52 }
  0x5a   : > { %1435 = vmatprep.subr.bf16.mxu1 %v1945_v53 }
  0x5c   : > { %1408 = vmatpush3.bf16.msra.mxu0 %v1951_v54 }
  0x5d   : > { %1436 = vmatpush3.bf16.msra.mxu1 %v1957_v55  ;;  %1409 = vmatprep.subr.bf16.mxu0 %v1964_v56 }
  0x5e   : > { %1437 = vmatprep.subr.bf16.mxu1 %v1970_v57 }
  0x60   : > { %1410 = vmatpush3.bf16.msra.mxu0 %v1976_v58 }
  0x61   : > { %1438 = vmatpush3.bf16.msra.mxu1 %v1982_v59  ;;  %1411 = vmatprep.subr.bf16.mxu0 %v1988_v60 }
  0x62   : > { %1439 = vmatprep.subr.bf16.mxu1 %v1994_v61 }
  0x64   : > { %1412 = vmatpush3.bf16.msra.mxu0 %v2000_v62 }
  0x65   : > { %1440 = vmatpush3.bf16.msra.mxu1 %v2006_v63  ;;  %1453 = vmatprep.subr.bf16.mxu0 %v1820_v32 }
  0x66   : > { %1481 = vmatprep.subr.bf16.mxu1 %v1825_v33 }
  0x67   : > { %752 = vmatmul.mubr.bf16.vlgmr.msra.gmra.mrb[8].mxu0 %v1633_v10 }
  0x68   : > { %801 = vmatmul.mubr.bf16.vlgmr.msra.gmra.mrb[8].mxu1 %v1636_v11  ;;  %1454 = vmatpush3.bf16.msra.mxu0 %v1831_v34 }
  0x69   : > { %1482 = vmatpush3.bf16.msra.mxu1 %v1837_v35  ;;  %1455 = vmatprep.subr.bf16.mxu0 %v1843_v36 }
  0x6a   : > { %1483 = vmatprep.subr.bf16.mxu1 %v1849_v37  ;;  %759 = vmatprep.mubr.bf16.mxu0 %v1639_v12 }
  0x6b   : > { %808 = vmatprep.mubr.bf16.mxu1 %v1642_v13 }
  0x6c   : > { %1456 = vmatpush3.bf16.msra.mxu0 %v1855_v38 }
  0x6d   : > { %1484 = vmatpush3.bf16.msra.mxu1 %v1861_v39  ;;  %1457 = vmatprep.subr.bf16.mxu0 %v1867_v40 }
  0x6e   : > { %1485 = vmatprep.subr.bf16.mxu1 %v1873_v41 }
  0x6f   : > { %760 = vmatmul.mubr.bf16.gmra.mrb[12].mxu0 %v1641_v14 }
  0x70   : > { %1458 = vmatpush3.bf16.msra.mxu0 %v1879_v42  ;;  %809 = vmatmul.mubr.bf16.gmra.mrb[12].mxu1 %v1644_v15 }
  0x71   : > { %1486 = vmatpush3.bf16.msra.mxu1 %v1885_v43  ;;  %1459 = vmatprep.subr.bf16.mxu0 %v1891_v44 }
  0x72   : > { %1487 = vmatprep.subr.bf16.mxu1 %v1897_v45  ;;  %906 = vmatprep.mubr.bf16.mxu0 %v1647_v16 }
  0x73   : > { %955 = vmatprep.mubr.bf16.mxu1 %v1650_v17 }
  0x74   : > { %1460 = vmatpush3.bf16.msra.mxu0 %v1903_v46 }
  0x75   : > { %1488 = vmatpush3.bf16.msra.mxu1 %v1909_v47  ;;  %1461 = vmatprep.subr.bf16.mxu0 %v1915_v48 }
  0x76   : > { %1489 = vmatprep.subr.bf16.mxu1 %v1921_v49 }
  0x78   : > { %1462 = vmatpush3.bf16.msra.mxu0 %v1927_v50 }
  0x79   : > { %1490 = vmatpush3.bf16.msra.mxu1 %v1933_v51  ;;  %1463 = vmatprep.subr.bf16.mxu0 %v1939_v52 }
  0x7a   : > { %1491 = vmatprep.subr.bf16.mxu1 %v1945_v53 }
  0x7c   : > { %1464 = vmatpush3.bf16.msra.mxu0 %v1951_v54 }
  0x7d   : > { %1492 = vmatpush3.bf16.msra.mxu1 %v1957_v55  ;;  %1465 = vmatprep.subr.bf16.mxu0 %v1964_v56 }
  0x7e   : > { %1493 = vmatprep.subr.bf16.mxu1 %v1970_v57 }
  0x80   : > { %1466 = vmatpush3.bf16.msra.mxu0 %v1976_v58 }
  0x81   : > { %1494 = vmatpush3.bf16.msra.mxu1 %v1982_v59  ;;  %1467 = vmatprep.subr.bf16.mxu0 %v1988_v60 }
  0x82   : > { %1495 = vmatprep.subr.bf16.mxu1 %v1994_v61 }
  0x84   : > { %1468 = vmatpush3.bf16.msra.mxu0 %v2000_v62 }
  0x85   : > { %1496 = vmatpush3.bf16.msra.mxu1 %v2006_v63  ;;  %1509 = vmatprep.subr.bf16.mxu0 %v1820_v32 }
  0x86   : > { %1537 = vmatprep.subr.bf16.mxu1 %v1825_v33 }
  0x87   : > { %907 = vmatmul.mubr.bf16.vlgmr.msra.gmra.mrb[16].mxu0 %v1645_v18 }
  0x88   : > { %956 = vmatmul.mubr.bf16.vlgmr.msra.gmra.mrb[16].mxu1 %v1648_v19  ;;  %1510 = vmatpush3.bf16.msra.mxu0 %v1831_v34  ;;  %v2143_v34 = vld [vmem:[%s2178_s2] ss:$0 sm:$0xff] }
  0x89   : > { %1538 = vmatpush3.bf16.msra.mxu1 %v1837_v35  ;;  %1511 = vmatprep.subr.bf16.mxu0 %v1843_v36 }
  0x8a   : > { %1539 = vmatprep.subr.bf16.mxu1 %v1849_v37  ;;  %914 = vmatprep.mubr.bf16.mxu0 %v1651_v20 }
  0x8b   : > { %963 = vmatprep.mubr.bf16.mxu1 %v1654_v21 }
  0x8c   : > { %1512 = vmatpush3.bf16.msra.mxu0 %v1855_v38 }
  0x8d   : > { %1540 = vmatpush3.bf16.msra.mxu1 %v1861_v39  ;;  %1513 = vmatprep.subr.bf16.mxu0 %v1867_v40 }
  0x8e   : > { %1541 = vmatprep.subr.bf16.mxu1 %v1873_v41 }
  0x8f   : > { %915 = vmatmul.mubr.bf16.gmra.mrb[20].mxu0 %v1653_v22 }
  0x90   : > { %1514 = vmatpush3.bf16.msra.mxu0 %v1879_v42  ;;  %964 = vmatmul.mubr.bf16.gmra.mrb[20].mxu1 %v1656_v23 }
  0x91   : > { %1542 = vmatpush3.bf16.msra.mxu1 %v1885_v43  ;;  %1515 = vmatprep.subr.bf16.mxu0 %v1891_v44 }
  0x92   : > { %1543 = vmatprep.subr.bf16.mxu1 %v1897_v45  ;;  %1061 = vmatprep.mubr.bf16.mxu0 %v1659_v24 }
  0x93   : > { %1110 = vmatprep.mubr.bf16.mxu1 %v1662_v25 }
  0x94   : > { %1516 = vmatpush3.bf16.msra.mxu0 %v1903_v46 }
  0x95   : > { %1544 = vmatpush3.bf16.msra.mxu1 %v1909_v47  ;;  %1517 = vmatprep.subr.bf16.mxu0 %v1915_v48 }
  0x96   : > { %1545 = vmatprep.subr.bf16.mxu1 %v1921_v49 }
  0x98   : > { %1518 = vmatpush3.bf16.msra.mxu0 %v1927_v50 }
  0x99   : > { %1546 = vmatpush3.bf16.msra.mxu1 %v1933_v51  ;;  %1519 = vmatprep.subr.bf16.mxu0 %v1939_v52 }
  0x9a   : > { %1547 = vmatprep.subr.bf16.mxu1 %v1945_v53 }
  0x9c   : > { %1520 = vmatpush3.bf16.msra.mxu0 %v1951_v54 }
  0x9d   : > { %1548 = vmatpush3.bf16.msra.mxu1 %v1957_v55  ;;  %1521 = vmatprep.subr.bf16.mxu0 %v1964_v56 }
  0x9e   : > { %1549 = vmatprep.subr.bf16.mxu1 %v1970_v57 }
  0xa0   : > { %1522 = vmatpush3.bf16.msra.mxu0 %v1976_v58 }
  0xa1   : > { %1550 = vmatpush3.bf16.msra.mxu1 %v1982_v59  ;;  %1523 = vmatprep.subr.bf16.mxu0 %v1988_v60 }
  0xa2   : > { %1551 = vmatprep.subr.bf16.mxu1 %v1994_v61 }
  0xa4   : > { %1524 = vmatpush3.bf16.msra.mxu0 %v2000_v62 }
  0xa5   : > { %1552 = vmatpush3.bf16.msra.mxu1 %v2006_v63 }
  0xa7   : > { %1062 = vmatmul.mubr.bf16.vlgmr.msra.gmra.mrb[24].mxu0 %v1657_v26 }
  0xa8   : > { %1111 = vmatmul.mubr.bf16.vlgmr.msra.gmra.mrb[24].mxu1 %v1660_v27  ;;  %1069 = vmatprep.mubr.bf16.mxu0 %v1663_v28 }
  0xa9   : > { %1118 = vmatprep.mubr.bf16.mxu1 %v1665_v29 }
  0xaf   : > { %1070 = vmatmul.mubr.bf16.gmra.mrb[28].mxu0 %v1667_v30 }
  0xb0   : > { %1119 = vmatmul.mubr.bf16.gmra.mrb[28].mxu1 %v1668_v31 }
 0x11a   : > { %v1357_v32 = vpop.f32.mrb[0].mxu0 }
 0x11b   : > { %v1385_v33 = vpop.f32.mrb[0].mxu1  ;;  %v1358_v35 = vpop.f32.mrb[1].mxu0 }
 0x11c   : > { %v1359_v36 = vadd.f32 %v1358_v35, %v1357_v32  ;;  %v1386_v37 = vpop.f32.mrb[1].mxu1  ;;  %v1360_v38 = vpop.f32.mrb[2].mxu0 }
 0x11d   : > { %v1387_v39 = vadd.f32 %v1386_v37, %v1385_v33  ;;  %v1388_v40 = vpop.f32.mrb[2].mxu1  ;;  %v1361_v41 = vpop.f32.mrb[3].mxu0 }
 0x11e   : > { %v603_v42 = vadd.f32 %v1359_v36, %v2143_v34  ;;  %v1362_v43 = vadd.f32 %v1361_v41, %v1360_v38  ;;  %v1389_v44 = vpop.f32.mrb[3].mxu1 }
 0x11f   : > { %v1390_v45 = vadd.f32 %v1389_v44, %v1388_v40 }
 0x120   : > { %v652_v46 = vadd.f32 %v1387_v39, %v603_v42  ;;  %v606_v47 = vadd.f32 %v1362_v43, %v2143_v34 }
 0x122   : > { %v655_v48 = vadd.f32 %v1390_v45, %v606_v47  ;;  %v1363_v49 = vpop.f32.mrb[4].mxu0  ;;  %v666_v16 = vmax.f32 %v652_v46, 0.0 }
 0x123   : > { %v1364_v50 = vpop.f32.mrb[5].mxu0  ;;  %v1391_v51 = vpop.f32.mrb[4].mxu1 }
 0x124   : > { %v1365_v52 = vadd.f32 %v1364_v50, %v1363_v49  ;;  %v1366_v53 = vpop.f32.mrb[6].mxu0  ;;  %v1392_v54 = vpop.f32.mrb[5].mxu1  ;;  %v667_v22 = vmax.f32 %v655_v48, 0.0 }
 0x125   : > { %v1367_v55 = vpop.f32.mrb[7].mxu0  ;;  %v1393_v56 = vadd.f32 %v1392_v54, %v1391_v51  ;;  %v1394_v57 = vpop.f32.mrb[6].mxu1 }
 0x126   : > { %v611_v58 = vadd.f32 %v1365_v52, %v2143_v34  ;;  %v1368_v59 = vadd.f32 %v1367_v55, %v1366_v53  ;;  %v1395_v60 = vpop.f32.mrb[7].mxu1 }
 0x127   : > { %v1396_v61 = vadd.f32 %v1395_v60, %v1394_v57 }
 0x128   : > { %v614_v62 = vadd.f32 %v1368_v59, %v2143_v34  ;;  %v660_v63 = vadd.f32 %v1393_v56, %v611_v58 }
 0x12a   : > { %v663_v0 = vadd.f32 %v1396_v61, %v614_v62  ;;  %v668_v39 = vmax.f32 %v660_v63, 0.0 }
 0x12c   : > { %v669_v42 = vmax.f32 %v663_v0, 0.0 }
 0x13a   : > { %v1413_v1 = vpop.f32.mrb[8].mxu0 }
 0x13b   : > { %v1441_v2 = vpop.f32.mrb[8].mxu1  ;;  %v1414_v3 = vpop.f32.mrb[9].mxu0 }
 0x13c   : > { %v1415_v4 = vadd.f32 %v1414_v3, %v1413_v1  ;;  %v1442_v5 = vpop.f32.mrb[9].mxu1  ;;  %v1416_v6 = vpop.f32.mrb[10].mxu0 }
 0x13d   : > { %v1443_v7 = vadd.f32 %v1442_v5, %v1441_v2  ;;  %v1444_v8 = vpop.f32.mrb[10].mxu1  ;;  %v1417_v9 = vpop.f32.mrb[11].mxu0 }
 0x13e   : > { %v754_v10 = vadd.f32 %v1415_v4, %v2143_v34  ;;  %v1418_v11 = vadd.f32 %v1417_v9, %v1416_v6  ;;  %v1445_v12 = vpop.f32.mrb[11].mxu1 }
 0x13f   : > { %v1446_v13 = vadd.f32 %v1445_v12, %v1444_v8 }
 0x140   : > { %v803_v14 = vadd.f32 %v1443_v7, %v754_v10  ;;  %v757_v15 = vadd.f32 %v1418_v11, %v2143_v34 }
 0x142   : > { %v817_v17 = vmax.f32 %v803_v14, 0.0  ;;  %v806_v18 = vadd.f32 %v1446_v13, %v757_v15  ;;  %v1419_v19 = vpop.f32.mrb[12].mxu0 }
 0x143   : > { %v1420_v20 = vpop.f32.mrb[13].mxu0  ;;  %v1447_v21 = vpop.f32.mrb[12].mxu1 }
 0x144   : > { %v821_v23 = vmax.f32 %v666_v16, %v817_v17  ;;  %v818_v24 = vmax.f32 %v806_v18, 0.0  ;;  %v1421_v25 = vadd.f32 %v1420_v20, %v1419_v19  ;;  %v1422_v26 = vpop.f32.mrb[14].mxu0  ;;  %v1448_v27 = vpop.f32.mrb[13].mxu1 }
 0x145   : > { %v1423_v28 = vpop.f32.mrb[15].mxu0  ;;  %v1449_v29 = vadd.f32 %v1448_v27, %v1447_v21  ;;  %v1450_v30 = vpop.f32.mrb[14].mxu1 }
 0x146   : > { %v822_v31 = vmax.f32 %v667_v22, %v818_v24  ;;  %v762_v32 = vadd.f32 %v1421_v25, %v2143_v34  ;;  %v1424_v33 = vadd.f32 %v1423_v28, %v1422_v26  ;;  %v1451_v35 = vpop.f32.mrb[15].mxu1 }
 0x147   : > { %v1452_v36 = vadd.f32 %v1451_v35, %v1450_v30 }
 0x148   : > { %v765_v37 = vadd.f32 %v1424_v33, %v2143_v34  ;;  %v811_v38 = vadd.f32 %v1449_v29, %v762_v32 }
 0x14a   : > { %v819_v40 = vmax.f32 %v811_v38, 0.0  ;;  %v814_v41 = vadd.f32 %v1452_v36, %v765_v37 }
 0x14c   : > { %v823_v43 = vmax.f32 %v668_v39, %v819_v40  ;;  %v820_v44 = vmax.f32 %v814_v41, 0.0 }
 0x14e   : > { %v824_v45 = vmax.f32 %v669_v42, %v820_v44 }
 0x15a   : > { %v1469_v46 = vpop.f32.mrb[16].mxu0 }
 0x15b   : > { %v1497_v47 = vpop.f32.mrb[16].mxu1  ;;  %v1470_v48 = vpop.f32.mrb[17].mxu0 }
 0x15c   : > { %v1471_v49 = vadd.f32 %v1470_v48, %v1469_v46  ;;  %v1498_v50 = vpop.f32.mrb[17].mxu1  ;;  %v1472_v51 = vpop.f32.mrb[18].mxu0 }
 0x15d   : > { %v1499_v52 = vadd.f32 %v1498_v50, %v1497_v47  ;;  %v1500_v53 = vpop.f32.mrb[18].mxu1  ;;  %v1473_v54 = vpop.f32.mrb[19].mxu0 }
 0x15e   : > { %v909_v55 = vadd.f32 %v1471_v49, %v2143_v34  ;;  %v1474_v56 = vadd.f32 %v1473_v54, %v1472_v51  ;;  %v1501_v57 = vpop.f32.mrb[19].mxu1 }
 0x15f   : > { %v1502_v58 = vadd.f32 %v1501_v57, %v1500_v53 }
 0x160   : > { %v958_v59 = vadd.f32 %v1499_v52, %v909_v55  ;;  %v912_v60 = vadd.f32 %v1474_v56, %v2143_v34 }
 0x162   : > { %v972_v61 = vmax.f32 %v958_v59, 0.0  ;;  %v961_v62 = vadd.f32 %v1502_v58, %v912_v60  ;;  %v1475_v63 = vpop.f32.mrb[20].mxu0 }
 0x163   : > { %v1476_v0 = vpop.f32.mrb[21].mxu0  ;;  %v1503_v1 = vpop.f32.mrb[20].mxu1 }
 0x164   : > { %v976_v2 = vmax.f32 %v821_v23, %v972_v61  ;;  %v973_v3 = vmax.f32 %v961_v62, 0.0  ;;  %v1477_v4 = vadd.f32 %v1476_v0, %v1475_v63  ;;  %v1478_v5 = vpop.f32.mrb[22].mxu0  ;;  %v1504_v6 = vpop.f32.mrb[21].mxu1 }
 0x165   : > { %v1479_v7 = vpop.f32.mrb[23].mxu0  ;;  %v1505_v8 = vadd.f32 %v1504_v6, %v1503_v1  ;;  %v1506_v9 = vpop.f32.mrb[22].mxu1 }
 0x166   : > { %v977_v10 = vmax.f32 %v822_v31, %v973_v3  ;;  %v917_v11 = vadd.f32 %v1477_v4, %v2143_v34  ;;  %v1480_v12 = vadd.f32 %v1479_v7, %v1478_v5  ;;  %v1507_v13 = vpop.f32.mrb[23].mxu1 }
 0x167   : > { %v1508_v14 = vadd.f32 %v1507_v13, %v1506_v9 }
 0x168   : > { %v920_v15 = vadd.f32 %v1480_v12, %v2143_v34  ;;  %v966_v16 = vadd.f32 %v1505_v8, %v917_v11 }
 0x16a   : > { %v974_v17 = vmax.f32 %v966_v16, 0.0  ;;  %v969_v18 = vadd.f32 %v1508_v14, %v920_v15 }
 0x16c   : > { %v978_v19 = vmax.f32 %v823_v43, %v974_v17  ;;  %v975_v20 = vmax.f32 %v969_v18, 0.0 }
 0x16e   : > { %v979_v21 = vmax.f32 %v824_v45, %v975_v20 }
 0x17a   : > { %v1525_v22 = vpop.f32.mrb[24].mxu0 }
 0x17b   : > { %v1553_v23 = vpop.f32.mrb[24].mxu1  ;;  %v1526_v24 = vpop.f32.mrb[25].mxu0 }
 0x17c   : > { %v1527_v25 = vadd.f32 %v1526_v24, %v1525_v22  ;;  %v1554_v26 = vpop.f32.mrb[25].mxu1  ;;  %v1528_v27 = vpop.f32.mrb[26].mxu0 }
 0x17d   : > { %v1555_v28 = vadd.f32 %v1554_v26, %v1553_v23  ;;  %v1556_v29 = vpop.f32.mrb[26].mxu1  ;;  %v1529_v30 = vpop.f32.mrb[27].mxu0 }
 0x17e   : > { %v1064_v31 = vadd.f32 %v1527_v25, %v2143_v34  ;;  %v1530_v32 = vadd.f32 %v1529_v30, %v1528_v27  ;;  %v1557_v33 = vpop.f32.mrb[27].mxu1 }
 0x17f   : > { %v1558_v35 = vadd.f32 %v1557_v33, %v1556_v29 }
 0x180   : > { %v1113_v36 = vadd.f32 %v1555_v28, %v1064_v31  ;;  %v1067_v37 = vadd.f32 %v1530_v32, %v2143_v34 }
 0x182   : > { %v1127_v38 = vmax.f32 %v1113_v36, 0.0  ;;  %v1116_v39 = vadd.f32 %v1558_v35, %v1067_v37  ;;  %v1531_v40 = vpop.f32.mrb[28].mxu0 }
 0x183   : > { %v1559_v41 = vpop.f32.mrb[28].mxu1  ;;  %v1532_v42 = vpop.f32.mrb[29].mxu0 }
 0x184   : > { %v1131_v43 = vmax.f32 %v976_v2, %v1127_v38  ;;  %v1128_v44 = vmax.f32 %v1116_v39, 0.0  ;;  %v1533_v45 = vadd.f32 %v1532_v42, %v1531_v40  ;;  %v1560_v46 = vpop.f32.mrb[29].mxu1  ;;  %v1534_v47 = vpop.f32.mrb[30].mxu0 }
 0x185   : > { %v1561_v48 = vadd.f32 %v1560_v46, %v1559_v41  ;;  %v1562_v49 = vpop.f32.mrb[30].mxu1  ;;  %v1535_v50 = vpop.f32.mrb[31].mxu0 }
 0x186   : > { %v1132_v51 = vmax.f32 %v977_v10, %v1128_v44  ;;  %v1072_v52 = vadd.f32 %v1533_v45, %v2143_v34  ;;  %v1536_v53 = vadd.f32 %v1535_v50, %v1534_v47  ;;  %v1563_v54 = vpop.f32.mrb[31].mxu1 }
 0x187   : > { %v1564_v55 = vadd.f32 %v1563_v54, %v1562_v49 }
 0x188   : > { %v1333_v56 = vpack.c.bf16 %v1132_v51, %v1131_v43  ;;  %v1121_v57 = vadd.f32 %v1561_v48, %v1072_v52  ;;  %v1075_v58 = vadd.f32 %v1536_v53, %v2143_v34 }
 0x18a   : > { %1334 = vst [vmem:[%s254_s7] sm:$0xff] %v1333_v56   ;;  %v1129_v59 = vmax.f32 %v1121_v57, 0.0  ;;  %v1124_v60 = vadd.f32 %v1564_v55, %v1075_v58 }
 0x18c   : > { %v1133_v61 = vmax.f32 %v978_v19, %v1129_v59  ;;  %v1130_v62 = vmax.f32 %v1124_v60, 0.0 }
 0x18e   : > { %v1134_v63 = vmax.f32 %v979_v21, %v1130_v62 }
 0x190   : > { %v1338_v0 = vpack.c.bf16 %v1134_v63, %v1133_v61 }
 0x192   : > { %1340 = vst [vmem:[%s254_s7 + $0x8] sm:$0xff] %v1338_v0  }
 0x193 PF: > { %p10_p9 = scmp.ge.s32.totalorder %s1730_s16, 4   ;;  %s2180_s12 = smov %s1687_s13 }
 0x194   : > { %s2181_s13 = smov %s1739_s19  ;;  %s2182_s14 = smov %s1730_s16 }
 0x195   :  { %12 = sbr.rel (!%p10_p9) target bundleno = 2 (0x2), region = 93 }

// kernel: lenet_forward.5
= control target key start
LH: loop header
LB: loop body
LE: loop exit
PB: predicated region body
PF: predicated region fallthrough
CT: control target
= control target key end

     0   :  { %v1245_v38 = vmov 0.0   ;;  %vm1246_vm0 = vmmov 0   ;;  %s1569_s1 = inlined_call_operand.vmem [shape: bf16[896,128], index: 1, kind: input, shape index: {}]   ;;  %s1570_s0 = inlined_call_operand.vmem [shape: bf16[16,896], index: 0, kind: input, shape index: {}]   ;;  %s1571_s3 = inlined_call_operand.vmem [shape: bf16[128,128], index: 3, kind: input, shape index: {}]   ;;  %s1572_s5 = inlined_call_operand.vmem [shape: bf16[128,128], index: 5, kind: input, shape index: {}]   ;;  %s1573_s2 = inlined_call_operand.vmem [shape: f32[1,128], index: 2, kind: input, shape index: {}]   ;;  %s1574_s4 = inlined_call_operand.vmem [shape: f32[1,128], index: 4, kind: input, shape index: {}]   ;;  %s1575_s6 = inlined_call_operand.vmem [shape: f32[1,128], index: 6, kind: input, shape index: {}]   ;;  %s1576_s7 = inlined_call_operand.vmem [shape: f32[16,128], index: 7, kind: output, shape index: {}]  }
   0x1   :  { %v1163_v0 = vld [vmem:[%s1569_s1 + $0x40] sm:$0xff]   ;;  %v1167_v4 = vld [vmem:[%s1569_s1 + $0x48] sm:$0xff]   ;;  %v1171_v8 = vld [vmem:[%s1569_s1 + $0x50] sm:$0xff]  }
   0x2   :  { %v1164_v1 = vld [vmem:[%s1569_s1] sm:$0xff]   ;;  %1008 = vmatprep.subr.bf16.mxu0 %v1163_v0  ;;  %v1168_v5 = vld [vmem:[%s1569_s1 + $0x8] sm:$0xff]   ;;  %v1172_v9 = vld [vmem:[%s1569_s1 + $0x10] sm:$0xff]  }
   0x3   :  { %v1165_v2 = vld [vmem:[%s1569_s1 + $0xc0] sm:$0xff]   ;;  %1009 = vmatpush3.bf16.msra.mxu0 %v1164_v1  ;;  %v1169_v6 = vld [vmem:[%s1569_s1 + $0xc8] sm:$0xff]   ;;  %v1173_v10 = vld [vmem:[%s1569_s1 + $0xd0] sm:$0xff]  }
   0x4   :  { %v1166_v3 = vld [vmem:[%s1569_s1 + $0x80] sm:$0xff]   ;;  %1030 = vmatprep.subr.bf16.mxu1 %v1165_v2  ;;  %1010 = vmatprep.subr.bf16.mxu0 %v1167_v4  ;;  %v1170_v7 = vld [vmem:[%s1569_s1 + $0x88] sm:$0xff]   ;;  %v1174_v11 = vld [vmem:[%s1569_s1 + $0x90] sm:$0xff]  }
   0x5   :  { %1031 = vmatpush3.bf16.msra.mxu1 %v1166_v3  ;;  %v1175_v12 = vld [vmem:[%s1569_s1 + $0x58] sm:$0xff]   ;;  %v1179_v16 = vld [vmem:[%s1569_s1 + $0x60] sm:$0xff]   ;;  %v1183_v20 = vld [vmem:[%s1569_s1 + $0x68] sm:$0xff]  }
   0x6   :  { %1032 = vmatprep.subr.bf16.mxu1 %v1169_v6  ;;  %v1176_v13 = vld [vmem:[%s1569_s1 + $0x18] sm:$0xff]   ;;  %v1180_v17 = vld [vmem:[%s1569_s1 + $0x20] sm:$0xff]   ;;  %v1184_v21 = vld [vmem:[%s1569_s1 + $0x28] sm:$0xff]  }
   0x7   :  { %1011 = vmatpush3.bf16.msra.mxu0 %v1168_v5  ;;  %v1177_v14 = vld [vmem:[%s1569_s1 + $0xd8] sm:$0xff]   ;;  %v1181_v18 = vld [vmem:[%s1569_s1 + $0xe0] sm:$0xff]   ;;  %v1185_v22 = vld [vmem:[%s1569_s1 + $0xe8] sm:$0xff]  }
   0x8   :  { %1012 = vmatprep.subr.bf16.mxu0 %v1171_v8  ;;  %v1178_v15 = vld [vmem:[%s1569_s1 + $0x98] sm:$0xff]   ;;  %v1182_v19 = vld [vmem:[%s1569_s1 + $0xa0] sm:$0xff]   ;;  %v1186_v23 = vld [vmem:[%s1569_s1 + $0xa8] sm:$0xff]  }
   0x9   :  { %1033 = vmatpush3.bf16.msra.mxu1 %v1170_v7  ;;  %v1187_v24 = vld [vmem:[%s1569_s1 + $0x70] sm:$0xff]   ;;  %v1191_v28 = vld [vmem:[%s1569_s1 + $0x78] sm:$0xff]   ;;  %v1196_v32 = vld [vmem:[%s1570_s0 + $0x4] ss:$28 sps:$4 sm:$0xff]  }
   0xa   :  { %1034 = vmatprep.subr.bf16.mxu1 %v1173_v10  ;;  %v1188_v25 = vld [vmem:[%s1569_s1 + $0x30] sm:$0xff]   ;;  %v1192_v29 = vld [vmem:[%s1569_s1 + $0x38] sm:$0xff]   ;;  %558 = vmatprep.mubr.bf16.mxu0 %v1196_v32  ;;  %v1198_v34 = vld [vmem:[%s1569_s1 + $0x140] sm:$0xff]  }
   0xb   :  { %1013 = vmatpush3.bf16.msra.mxu0 %v1172_v9  ;;  %v1189_v26 = vld [vmem:[%s1569_s1 + $0xf0] sm:$0xff]   ;;  %v1193_v30 = vld [vmem:[%s1569_s1 + $0xf8] sm:$0xff]   ;;  %v1199_v35 = vld [vmem:[%s1570_s0 + $0x8] ss:$28 sps:$4 sm:$0xff]  }
   0xc   :  { %1014 = vmatprep.subr.bf16.mxu0 %v1175_v12  ;;  %v1190_v27 = vld [vmem:[%s1569_s1 + $0xb0] sm:$0xff]   ;;  %v1194_v31 = vld [vmem:[%s1570_s0] ss:$28 sps:$4 sm:$0xff]   ;;  %v1201_v36 = vld [vmem:[%s1570_s0 + $0xc] ss:$28 sps:$4 sm:$0xff]  }
   0xd   :  { %1035 = vmatpush3.bf16.msra.mxu1 %v1174_v11  ;;  %v1197_v33 = vld [vmem:[%s1569_s1 + $0xb8] sm:$0xff]   ;;  %v1202_v37 = vld [vmem:[%s1569_s1 + $0x100] sm:$0xff]   ;;  %599 = vmatprep.mubr.bf16.mxu1 %v1201_v36  ;;  %v1204_v40 = vld [vmem:[%s1569_s1 + $0x148] sm:$0xff]  }
   0xe   :  { %1036 = vmatprep.subr.bf16.mxu1 %v1177_v14  ;;  %v1203_v39 = vld [vmem:[%s1569_s1 + $0x180] sm:$0xff]   ;;  %v1205_v41 = vld [vmem:[%s1569_s1 + $0x108] sm:$0xff]   ;;  %v1207_v43 = vld [vmem:[%s1569_s1 + $0x150] sm:$0xff]  }
   0xf   :  { %1015 = vmatpush3.bf16.msra.mxu0 %v1176_v13  ;;  %v1206_v42 = vld [vmem:[%s1569_s1 + $0x188] sm:$0xff]   ;;  %v1208_v44 = vld [vmem:[%s1569_s1 + $0x110] sm:$0xff]   ;;  %v1210_v46 = vld [vmem:[%s1569_s1 + $0x158] sm:$0xff]  }
  0x10   :  { %1016 = vmatprep.subr.bf16.mxu0 %v1179_v16  ;;  %v1209_v45 = vld [vmem:[%s1569_s1 + $0x190] sm:$0xff]   ;;  %v1211_v47 = vld [vmem:[%s1569_s1 + $0x118] sm:$0xff]   ;;  %v1213_v49 = vld [vmem:[%s1569_s1 + $0x160] sm:$0xff]  }
  0x11   :  { %1037 = vmatpush3.bf16.msra.mxu1 %v1178_v15  ;;  %v1212_v48 = vld [vmem:[%s1569_s1 + $0x198] sm:$0xff]   ;;  %v1214_v50 = vld [vmem:[%s1569_s1 + $0x120] sm:$0xff]   ;;  %v1216_v52 = vld [vmem:[%s1569_s1 + $0x168] sm:$0xff]  }
  0x12   :  { %1038 = vmatprep.subr.bf16.mxu1 %v1181_v18  ;;  %v1215_v51 = vld [vmem:[%s1569_s1 + $0x1a0] sm:$0xff]   ;;  %v1217_v53 = vld [vmem:[%s1569_s1 + $0x128] sm:$0xff]   ;;  %v1219_v55 = vld [vmem:[%s1569_s1 + $0x170] sm:$0xff]  }
  0x13   :  { %1017 = vmatpush3.bf16.msra.mxu0 %v1180_v17  ;;  %v1218_v54 = vld [vmem:[%s1569_s1 + $0x1a8] sm:$0xff]   ;;  %v1220_v56 = vld [vmem:[%s1569_s1 + $0x130] sm:$0xff]   ;;  %v1222_v59 = vld [vmem:[%s1569_s1 + $0x178] sm:$0xff]  }
  0x14   :  { %1018 = vmatprep.subr.bf16.mxu0 %v1183_v20  ;;  %v1221_v57 = vld [vmem:[%s1569_s1 + $0x1b0] sm:$0xff]   ;;  %v1223_v60 = vld [vmem:[%s1569_s1 + $0x138] sm:$0xff]   ;;  %v1229_v0 = vld [vmem:[%s1571_s3] sm:$0xff]  }
  0x15   :  { %1039 = vmatpush3.bf16.msra.mxu1 %v1182_v19  ;;  %v1226_v58 = vld [vmem:[%s1570_s0 + $0x14] ss:$28 sps:$4 sm:$0xff]   ;;  %v1227_v61 = vld [vmem:[%s1569_s1 + $0x1b8] sm:$0xff]   ;;  %v1230_v1 = vld [vmem:[%s1571_s3 + $0x8] sm:$0xff]  }
  0x16   :  { %1040 = vmatprep.subr.bf16.mxu1 %v1185_v22  ;;  %v1224_v62 = vld [vmem:[%s1570_s0 + $0x10] ss:$28 sps:$4 sm:$0xff]   ;;  %v1228_v63 = vld [vmem:[%s1570_s0 + $0x18] ss:$28 sps:$4 sm:$0xff]   ;;  %v1233_v4 = vld [vmem:[%s1571_s3 + $0x20] sm:$0xff]  }
  0x17   :  { %1019 = vmatpush3.bf16.msra.mxu0 %v1184_v21  ;;  %v1231_v2 = vld [vmem:[%s1571_s3 + $0x10] sm:$0xff]   ;;  %v1232_v3 = vld [vmem:[%s1571_s3 + $0x18] sm:$0xff]   ;;  %v1234_v5 = vld [vmem:[%s1571_s3 + $0x28] sm:$0xff]  }
  0x18   :  { %1020 = vmatprep.subr.bf16.mxu0 %v1187_v24  ;;  %v1235_v6 = vld [vmem:[%s1571_s3 + $0x30] sm:$0xff]   ;;  %v1236_v7 = vld [vmem:[%s1571_s3 + $0x38] sm:$0xff]   ;;  %v1237_v8 = vld [vmem:[%s1572_s5] sm:$0xff]  }
  0x19   :  { %1041 = vmatpush3.bf16.msra.mxu1 %v1186_v23  ;;  %v1238_v9 = vld [vmem:[%s1572_s5 + $0x8] sm:$0xff]   ;;  %v1239_v10 = vld [vmem:[%s1572_s5 + $0x10] sm:$0xff]   ;;  %v1240_v11 = vld [vmem:[%s1572_s5 + $0x18] sm:$0xff]  }
  0x1a   :  { %1042 = vmatprep.subr.bf16.mxu1 %v1189_v26  ;;  %v1241_v12 = vld [vmem:[%s1572_s5 + $0x20] sm:$0xff]   ;;  %v1242_v13 = vld [vmem:[%s1572_s5 + $0x28] sm:$0xff]  }
  0x1b   :  { %1021 = vmatpush3.bf16.msra.mxu0 %v1188_v25  ;;  %v926_v15 = vld [vmem:[%s1573_s2] ss:$0 sm:$0xff] }
  0x1c   :  { %1022 = vmatprep.subr.bf16.mxu0 %v1191_v28 }
  0x1d   :  { %1043 = vmatpush3.bf16.msra.mxu1 %v1190_v27 }
  0x1e   :  { %1044 = vmatprep.subr.bf16.mxu1 %v1193_v30 }
  0x1f   :  { %1023 = vmatpush3.bf16.msra.mxu0 %v1192_v29 }
  0x20   :  { %1052 = vmatprep.subr.bf16.mxu0 %v1198_v34 }
  0x21   :  { %1045 = vmatpush3.bf16.msra.mxu1 %v1197_v33 }
  0x22   :  { %559 = vmatmul.mubr.bf16.vlgmr.msra.gmra.mrb[0].mxu0 %v1194_v31  ;;  %1101 = vmatprep.subr.bf16.mxu1 %v1245_v38 }
  0x23   :  { %1053 = vmatpush3.bf16.msra.mxu0 %v1202_v37  ;;  %640 = vmatprep.mubr.bf16.mxu0 %v1226_v58 }
  0x24   :  { %600 = vmatmul.mubr.bf16.vlgmr.msra.gmra.mrb[0].mxu1 %v1199_v35  ;;  %1054 = vmatprep.subr.bf16.mxu0 %v1204_v40 }
  0x25   :  { %1102 = vmatpush3.bf16.msra.mxu1 %v1203_v39  ;;  %1117 = vmatprep.mubr.msk.bf16.mxu1 %vm1246_vm0, %v1245_v38 }
  0x26   :  { %1103 = vmatprep.subr.bf16.mxu1 %v1245_v38 }
  0x27   :  { %1055 = vmatpush3.bf16.msra.mxu0 %v1205_v41 }
  0x28   :  { %1056 = vmatprep.subr.bf16.mxu0 %v1207_v43 }
  0x29   :  { %1104 = vmatpush3.bf16.msra.mxu1 %v1206_v42 }
  0x2a   :  { %1105 = vmatprep.subr.bf16.mxu1 %v1245_v38 }
  0x2b   :  { %1057 = vmatpush3.bf16.msra.mxu0 %v1208_v44 }
  0x2c   :  { %1058 = vmatprep.subr.bf16.mxu0 %v1210_v46 }
  0x2d   :  { %1106 = vmatpush3.bf16.msra.mxu1 %v1209_v45 }
  0x2e   :  { %1107 = vmatprep.subr.bf16.mxu1 %v1245_v38 }
  0x2f   :  { %1059 = vmatpush3.bf16.msra.mxu0 %v1211_v47 }
  0x30   :  { %1060 = vmatprep.subr.bf16.mxu0 %v1213_v49  ;;  %v1243_v49 = vld [vmem:[%s1572_s5 + $0x30] sm:$0xff]  }
  0x31   :  { %1108 = vmatpush3.bf16.msra.mxu1 %v1212_v48 }
  0x32   :  { %1109 = vmatprep.subr.bf16.mxu1 %v1245_v38 }
  0x33   :  { %1061 = vmatpush3.bf16.msra.mxu0 %v1214_v50  ;;  %v1244_v50 = vld [vmem:[%s1572_s5 + $0x38] sm:$0xff]  }
  0x34   :  { %1062 = vmatprep.subr.bf16.mxu0 %v1216_v52 }
  0x35   :  { %1110 = vmatpush3.bf16.msra.mxu1 %v1215_v51  ;;  %v990_v51 = vld [vmem:[%s1574_s4] ss:$0 sm:$0xff] }
  0x36   :  { %1111 = vmatprep.subr.bf16.mxu1 %v1245_v38 }
  0x37   :  { %1063 = vmatpush3.bf16.msra.mxu0 %v1217_v53 }
  0x38   :  { %1064 = vmatprep.subr.bf16.mxu0 %v1219_v55 }
  0x39   :  { %1112 = vmatpush3.bf16.msra.mxu1 %v1218_v54 }
  0x3a   :  { %1113 = vmatprep.subr.bf16.mxu1 %v1245_v38 }
  0x3b   :  { %1065 = vmatpush3.bf16.msra.mxu0 %v1220_v56 }
  0x3c   :  { %1066 = vmatprep.subr.bf16.mxu0 %v1222_v59 }
  0x3d   :  { %1114 = vmatpush3.bf16.msra.mxu1 %v1221_v57 }
  0x3e   :  { %1115 = vmatprep.subr.bf16.mxu1 %v1245_v38 }
  0x3f   :  { %1067 = vmatpush3.bf16.msra.mxu0 %v1223_v60 }
  0x40   :  { %1121 = vmatprep.subr.bf16.mxu0 %v1245_v38 }
  0x41   :  { %1116 = vmatpush3.bf16.msra.mxu1 %v1227_v61 }
  0x42   :  { %1141 = vmatprep.subr.bf16.mxu1 %v1245_v38  ;;  %641 = vmatmul.mubr.bf16.vlgmr.msra.gmra.mrb[4].mxu0 %v1224_v62 }
  0x43   :  { %1137 = vmatprep.mubr.msk.bf16.mxu0 %vm1246_vm0, %v1245_v38  ;;  %1122 = vmatpush3.bf16.msra.mxu0 %v1229_v0 }
  0x44   :  { %1118 = vmatmul.mubr.bf16.vlgmr.msra.gmra.mrb[4].mxu1 %v1228_v63  ;;  %1123 = vmatprep.subr.bf16.mxu0 %v1245_v38 }
  0x45   :  { %1157 = vmatprep.mubr.msk.bf16.mxu1 %vm1246_vm0, %v1245_v38  ;;  %1142 = vmatpush3.bf16.msra.mxu1 %v1237_v8 }
  0x46   :  { %1143 = vmatprep.subr.bf16.mxu1 %v1245_v38 }
  0x47   :  { %1124 = vmatpush3.bf16.msra.mxu0 %v1230_v1 }
  0x48   :  { %1125 = vmatprep.subr.bf16.mxu0 %v1245_v38 }
  0x49   :  { %1144 = vmatpush3.bf16.msra.mxu1 %v1238_v9 }
  0x4a   :  { %1145 = vmatprep.subr.bf16.mxu1 %v1245_v38 }
  0x4b   :  { %1126 = vmatpush3.bf16.msra.mxu0 %v1231_v2 }
  0x4c   :  { %1127 = vmatprep.subr.bf16.mxu0 %v1245_v38 }
  0x4d   :  { %1146 = vmatpush3.bf16.msra.mxu1 %v1239_v10 }
  0x4e   :  { %1147 = vmatprep.subr.bf16.mxu1 %v1245_v38 }
  0x4f   :  { %1128 = vmatpush3.bf16.msra.mxu0 %v1232_v3 }
  0x50   :  { %1129 = vmatprep.subr.bf16.mxu0 %v1245_v38 }
  0x51   :  { %1148 = vmatpush3.bf16.msra.mxu1 %v1240_v11 }
  0x52   :  { %1149 = vmatprep.subr.bf16.mxu1 %v1245_v38 }
  0x53   :  { %1130 = vmatpush3.bf16.msra.mxu0 %v1233_v4 }
  0x54   :  { %1131 = vmatprep.subr.bf16.mxu0 %v1245_v38 }
  0x55   :  { %1150 = vmatpush3.bf16.msra.mxu1 %v1241_v12 }
  0x56   :  { %1151 = vmatprep.subr.bf16.mxu1 %v1245_v38 }
  0x57   :  { %1132 = vmatpush3.bf16.msra.mxu0 %v1234_v5 }
  0x58   :  { %1133 = vmatprep.subr.bf16.mxu0 %v1245_v38 }
  0x59   :  { %1152 = vmatpush3.bf16.msra.mxu1 %v1242_v13 }
  0x5a   :  { %1153 = vmatprep.subr.bf16.mxu1 %v1245_v38 }
  0x5b   :  { %1134 = vmatpush3.bf16.msra.mxu0 %v1235_v6 }
  0x5c   :  { %1135 = vmatprep.subr.bf16.mxu0 %v1245_v38 }
  0x5d   :  { %1154 = vmatpush3.bf16.msra.mxu1 %v1243_v49 }
  0x5e   :  { %1155 = vmatprep.subr.bf16.mxu1 %v1245_v38  ;;  %v999_v38 = vld [vmem:[%s1575_s6] ss:$0 sm:$0xff] }
  0x5f   :  { %1136 = vmatpush3.bf16.msra.mxu0 %v1236_v7 }
  0x61   :  { %1156 = vmatpush3.bf16.msra.mxu1 %v1244_v50 }
  0xf5   :  { %v1024_v14 = vpop.f32.mrb[0].mxu0 }
  0xf6   :  { %v1025_v16 = vpop.f32.mrb[1].mxu0 }
  0xf7   :  { %v1026_v17 = vadd.f32 %v1025_v16, %v1024_v14  ;;  %v1027_v18 = vpop.f32.mrb[2].mxu0  ;;  %v1046_v19 = vpop.f32.mrb[0].mxu1 }
  0xf8   :  { %v1028_v20 = vpop.f32.mrb[3].mxu0  ;;  %v1047_v23 = vpop.f32.mrb[1].mxu1 }
  0xf9   :  { %v561_v21 = vadd.f32 %v1026_v17, %v926_v15  ;;  %v1029_v22 = vadd.f32 %v1028_v20, %v1027_v18  ;;  %v1048_v24 = vadd.f32 %v1047_v23, %v1046_v19  ;;  %v1049_v25 = vpop.f32.mrb[2].mxu1 }
  0xfa   :  { %v1050_v27 = vpop.f32.mrb[3].mxu1 }
  0xfb   :  { %v564_v26 = vadd.f32 %v1029_v22, %v926_v15  ;;  %v602_v28 = vadd.f32 %v1048_v24, %v561_v21  ;;  %v1051_v29 = vadd.f32 %v1050_v27, %v1049_v25 }
  0xfd   :  { %v605_v30 = vadd.f32 %v1051_v29, %v564_v26 }
 0x115   :  { %v1068_v31 = vpop.f32.mrb[4].mxu0 }
 0x116   :  { %v1069_v32 = vpop.f32.mrb[5].mxu0 }
 0x117   :  { %v683_v33 = vpop.f32.mrb[4].mxu1  ;;  %v1070_v34 = vadd.f32 %v1069_v32, %v1068_v31  ;;  %v1071_v35 = vpop.f32.mrb[6].mxu0 }
 0x118   :  { %v1119_v36 = vpop.f32.mrb[5].mxu1  ;;  %v1072_v37 = vpop.f32.mrb[7].mxu0 }
 0x119   :  { %v686_v39 = vpop.f32.mrb[6].mxu1  ;;  %v643_v40 = vadd.f32 %v1070_v34, %v602_v28  ;;  %v1073_v41 = vadd.f32 %v1072_v37, %v1071_v35 }
 0x11a   :  { %v1120_v42 = vpop.f32.mrb[7].mxu1 }
 0x11b   :  { %v684_v43 = vadd.f32 %v683_v33, %v643_v40  ;;  %v646_v44 = vadd.f32 %v1073_v41, %v605_v30 }
 0x11d   :  { %v687_v45 = vadd.f32 %v686_v39, %v646_v44  ;;  %v690_v46 = vmax.f32 %v684_v43, 0.0 }
 0x11f   :  { %v691_v47 = vmax.f32 %v687_v45, 0.0 }
 0x121   :  { %v692_v48 = vpack.c.bf16 %v691_v47, %v690_v46 }
 0x123   :  { %1138 = vmatmul.mubr.bf16.vlgmr.msra.gmra.mrb[8].mxu0 %v692_v48 }
 0x1f6   :  { %v798_v52 = vpop.f32.mrb[8].mxu0 }
 0x1f7   :  { %v799_v53 = vadd.f32 %v990_v51, %v798_v52  ;;  %v1139_v54 = vpop.f32.mrb[9].mxu0 }
 0x1f8   :  { %v801_v55 = vpop.f32.mrb[10].mxu0 }
 0x1f9   :  { %v802_v56 = vadd.f32 %v990_v51, %v801_v55  ;;  %v1140_v57 = vpop.f32.mrb[11].mxu0  ;;  %v805_v58 = vmax.f32 %v799_v53, 0.0 }
 0x1fb   :  { %v806_v59 = vmax.f32 %v802_v56, 0.0 }
 0x1fd   :  { %v807_v60 = vpack.c.bf16 %v806_v59, %v805_v58 }
 0x1ff   :  { %1158 = vmatmul.mubr.bf16.vlgmr.msra.gmra.mrb[8].mxu1 %v807_v60 }
 0x2d2   :  { %v913_v61 = vpop.f32.mrb[8].mxu1 }
 0x2d3   :  { %v914_v62 = vadd.f32 %v999_v38, %v913_v61  ;;  %v1159_v63 = vpop.f32.mrb[9].mxu1 }
 0x2d4   :  { %v916_v0 = vpop.f32.mrb[10].mxu1 }
 0x2d5   :  { %920 = vst [vmem:[%s1576_s7] sm:$0xff] %v914_v62  ;;  %v917_v1 = vadd.f32 %v999_v38, %v916_v0  ;;  %v1160_v2 = vpop.f32.mrb[11].mxu1 }
 0x2d7   :  { %921 = vst [vmem:[%s1576_s7 + $0x8] sm:$0xff] %v917_v1 }

</bundles_post_ra>
